<compile_context>
chip_gen: v6e
topology: v6e:2x2x1
jax: 0.10.0
libtpu: 0.0.40
codegen_flags: <defaults>
</compile_context>

<pallas_src>
import jax
import jax.numpy as jnp
from jax import lax
from jax.experimental import pallas as pl
from jax.experimental.pallas import tpu as pltpu

# ----- model hyper-parameters (small synthetic config) -----
B = 8          # batch size (multiple of 8 -> fills all vreg sublanes)
H = 32         # hidden_size
E = 32         # embedding_dim (== hidden_size so the GRU stack is uniform)
S = 8          # max encoder sequence length
L = 2          # decoder_num_layers
V = 128        # voc_length / output_size (multiple of 128 -> lane-dense output)


def _linear_T(x, w):
    # x: [m, in], w: [out, in] (PyTorch nn.Linear layout)  ->  x @ w.T : [m, out]
    return lax.dot_general(x, w, (((1,), (1,)), ((), ())),
                           preferred_element_type=jnp.float32)


def _decoder_kernel(ids_ref, emb_ref, h0_ref, enc_ref,
                    wih_ref, whh_ref, brz_ref, bin_ref, bhn_ref,
                    wch_ref, wcc_ref, bc_ref, wo_ref, bo_ref,
                    out_ref, hid_ref):
    batch = ids_ref.shape[0]
    voc = emb_ref.shape[0]
    num_layers = h0_ref.shape[0]

    # ---- embedding lookup as a one-hot MXU matmul (no per-row dynamic loads) ----
    ids = ids_ref[...]                                            # [B, 1] int32
    onehot = (ids == lax.broadcasted_iota(jnp.int32, (batch, voc), 1)
              ).astype(jnp.float32)                               # [B, V]
    x = jnp.dot(onehot, emb_ref[...],
                preferred_element_type=jnp.float32)               # [B, E]
    # embedding dropout: identity (eval mode)

    # ---- multi-layer GRU, one time step (PyTorch gate order r, z, n) ----
    # Per-gate weights keep every matmul lane-aligned; no 0:H/H:2H lane slices.
    for l in range(num_layers):
        h_prev = h0_ref[l]                                        # [B, H]
        gi_r = _linear_T(x, wih_ref[l, 0])
        gi_z = _linear_T(x, wih_ref[l, 1])
        gi_n = _linear_T(x, wih_ref[l, 2])
        gh_r = _linear_T(h_prev, whh_ref[l, 0])
        gh_z = _linear_T(h_prev, whh_ref[l, 1])
        gh_n = _linear_T(h_prev, whh_ref[l, 2])
        r = jax.nn.sigmoid(gi_r + gh_r + brz_ref[l, 0])           # b_ih_r + b_hh_r folded
        z = jax.nn.sigmoid(gi_z + gh_z + brz_ref[l, 1])           # b_ih_z + b_hh_z folded
        n = jnp.tanh(gi_n + bin_ref[l] + r * (gh_n + bhn_ref[l]))
        h_new = (1.0 - z) * n + z * h_prev                        # [B, H]
        hid_ref[l, :, :] = h_new                                  # aliased with last_hidden
        x = h_new                                                 # feeds next layer

    rnn_output = x                                                # [B, H] (top layer)

    # ---- dot attention as batched MXU contractions (batch-major encoder) ----
    enc = enc_ref[...]                                            # [B, S, H]
    q = rnn_output[:, None, :]                                    # [B, 1, H]
    scores = jnp.einsum("bqh,bkh->bqk", q, enc,
                        preferred_element_type=jnp.float32)       # [B, 1, S]
    m = jnp.max(scores, axis=-1, keepdims=True)
    e = jnp.exp(scores - m)
    attn = e * pl.reciprocal(jnp.sum(e, axis=-1, keepdims=True), approx=True)
    context = jnp.einsum("bqk,bkh->bqh", attn, enc,
                         preferred_element_type=jnp.float32)[:, 0, :]   # [B, H]

    # ---- concat -> Linear -> tanh, as two split-weight matmuls (no lane concat) ----
    concat_out = jnp.tanh(_linear_T(rnn_output, wch_ref[...]) +
                          _linear_T(context, wcc_ref[...]) + bc_ref[...])   # [B, H]

    # ---- output Linear -> softmax(dim=1) ----
    logits = _linear_T(concat_out, wo_ref[...]) + bo_ref[...]     # [B, V]
    lm = jnp.max(logits, axis=1, keepdims=True)
    le = jnp.exp(logits - lm)
    out_ref[...] = le * pl.reciprocal(jnp.sum(le, axis=1, keepdims=True), approx=True)


def init_params(key):
    """Parameters in PyTorch layouts (gate order r, z, n; Linear as [out, in])."""
    ks = jax.random.split(key, 9)
    sc_h = 1.0 / jnp.sqrt(jnp.float32(H))
    sc_2h = 1.0 / jnp.sqrt(jnp.float32(2 * H))
    u = lambda k, shape, s: jax.random.uniform(k, shape, jnp.float32, -s, s)
    return {
        "embedding": jax.random.normal(ks[0], (V, E), jnp.float32) * 0.1,
        "w_ih": u(ks[1], (L, 3 * H, H), sc_h),   # layer-0 input dim == E == H assumed
        "w_hh": u(ks[2], (L, 3 * H, H), sc_h),
        "b_ih": u(ks[3], (L, 3 * H), sc_h),
        "b_hh": u(ks[4], (L, 3 * H), sc_h),
        "W_concat": u(ks[5], (H, 2 * H), sc_2h),
        "b_concat": u(ks[6], (1, H), sc_2h),
        "W_out": u(ks[7], (V, H), sc_h),
        "b_out": u(ks[8], (1, V), sc_h),
    }


def prepare_params(params):
    """One-time restructuring from PyTorch layouts to kernel-friendly layouts."""
    b_ih = params["b_ih"].reshape(L, 3, 1, H)
    b_hh = params["b_hh"].reshape(L, 3, 1, H)
    return {
        "embedding": params["embedding"],                # [V, E]
        "w_ih": params["w_ih"].reshape(L, 3, H, H),      # per-gate (r, z, n)
        "w_hh": params["w_hh"].reshape(L, 3, H, H),
        "b_rz": (b_ih + b_hh)[:, 0:2],                   # [L, 2, 1, H] folded r/z biases
        "b_in": b_ih[:, 2],                              # [L, 1, H]
        "b_hn": b_hh[:, 2],                              # [L, 1, H]
        "Wc_h": params["W_concat"][:, :H],               # acts on rnn_output
        "Wc_c": params["W_concat"][:, H:],               # acts on context
        "b_concat": params["b_concat"],
        "W_out": params["W_out"],
        "b_out": params["b_out"],
    }


@jax.jit
def decoder_rnn_forward(kparams, input_step, last_hidden, encoder_outputs):
    # Token ids as a [B, 1] int32 column (consumed by an in-kernel one-hot matmul).
    ids = input_step.reshape(-1, 1).astype(jnp.int32)            # [B, 1]
    # Batch-major encoder layout for MXU-friendly batched attention contractions.
    enc_bsh = jnp.transpose(encoder_outputs, (1, 0, 2))          # [B, S, H]

    vmem = lambda: pl.BlockSpec(memory_space=pltpu.MemorySpace.VMEM)

    out_probs, new_hidden = pl.pallas_call(
        _decoder_kernel,
        out_shape=(
            jax.ShapeDtypeStruct((B, V), jnp.float32),
            jax.ShapeDtypeStruct((L, B, H), jnp.float32),
        ),
        in_specs=[vmem() for _ in range(14)],
        out_specs=(vmem(), vmem()),
        # Operand 2 is last_hidden; the new hidden state is written back into the
        # same HBM buffer.  (Donate the hidden arg at the jit boundary in a real
        # autoregressive decode loop.)
        input_output_aliases={2: 1},
    )(ids,
      kparams["embedding"], last_hidden, enc_bsh,
      kparams["w_ih"], kparams["w_hh"],
      kparams["b_rz"], kparams["b_in"], kparams["b_hn"],
      kparams["Wc_h"], kparams["Wc_c"], kparams["b_concat"],
      kparams["W_out"], kparams["b_out"])
    return out_probs, new_hidden


def _ref_linear_T(x, w):
    return lax.dot_general(x, w, (((1,), (1,)), ((), ())),
                           precision=lax.Precision.HIGHEST,
                           preferred_element_type=jnp.float32)


def reference_forward(params, input_step, last_hidden, encoder_outputs):
    """Pure-JAX mirror of the PyTorch DecoderRNN forward (dot attention, eval mode)."""
    emb = jnp.take(params["embedding"], input_step[0], axis=0)   # [B, E]
    x, new_h = emb, []
    for l in range(L):
        h_prev = last_hidden[l]
        gi = _ref_linear_T(x, params["w_ih"][l]) + params["b_ih"][l]
        gh = _ref_linear_T(h_prev, params["w_hh"][l]) + params["b_hh"][l]
        r = jax.nn.sigmoid(gi[:, :H] + gh[:, :H])
        z = jax.nn.sigmoid(gi[:, H:2 * H] + gh[:, H:2 * H])
        n = jnp.tanh(gi[:, 2 * H:] + r * gh[:, 2 * H:])
        x = (1.0 - z) * n + z * h_prev
        new_h.append(x)
    rnn_out = x
    scores = jnp.sum(rnn_out[None, :, :] * encoder_outputs, axis=2).T    # [B, S]
    attn = jax.nn.softmax(scores, axis=1)
    context = jnp.einsum("bs,sbh->bh", attn, encoder_outputs,
                         precision=lax.Precision.HIGHEST)
    cat = jnp.concatenate([rnn_out, context], axis=1)
    co = jnp.tanh(_ref_linear_T(cat, params["W_concat"]) + params["b_concat"])
    logits = _ref_linear_T(co, params["W_out"]) + params["b_out"]
    return jax.nn.softmax(logits, axis=1), jnp.stack(new_h, axis=0)


if __name__ == "__main__":
    key = jax.random.PRNGKey(0)
    kp, k1, k2, k3 = jax.random.split(key, 4)

    params = init_params(kp)
    kparams = prepare_params(params)

    input_step = jax.random.randint(k1, (1, B), 0, V, dtype=jnp.int32)   # [1, B]
    last_hidden = jax.random.normal(k2, (L, B, H), jnp.float32)          # [L, B, H]
    encoder_outputs = jax.random.normal(k3, (S, B, H), jnp.float32)      # [S, B, H]

    # Pure-JAX reference (computed first; validates the weight restructuring too).
    ref_out, ref_hid = reference_forward(params, input_step, last_hidden,
                                         encoder_outputs)
    ref_out, ref_hid = jax.block_until_ready((ref_out, ref_hid))

    output, hidden = decoder_rnn_forward(kparams, input_step, last_hidden,
                                         encoder_outputs)
    output, hidden = jax.block_until_ready((output, hidden))

    assert output.shape == (B, V) and hidden.shape == (L, B, H)
    # rows are softmax distributions (approx reciprocal -> slightly relaxed tol)
    assert bool(jnp.allclose(jnp.sum(output, axis=1), 1.0, atol=5e-3))
    assert bool(jnp.allclose(output, ref_out, atol=2e-3, rtol=2e-3))
    assert bool(jnp.allclose(hidden, ref_hid, atol=5e-3, rtol=5e-3))
    print("KERNEL_OK")
</pallas_src>

<mosaic_0001>
module attributes {stable_mosaic.version = 11 : i64} {
  func.func @_decoder_kernel(%arg0: memref<8x1xi32, #tpu.memory_space<vmem>>, %arg1: memref<128x32xf32, #tpu.memory_space<vmem>>, %arg2: memref<2x8x32xf32, #tpu.memory_space<vmem>>, %arg3: memref<8x8x32xf32, #tpu.memory_space<vmem>>, %arg4: memref<2x3x32x32xf32, #tpu.memory_space<vmem>>, %arg5: memref<2x3x32x32xf32, #tpu.memory_space<vmem>>, %arg6: memref<2x2x1x32xf32, #tpu.memory_space<vmem>>, %arg7: memref<2x1x32xf32, #tpu.memory_space<vmem>>, %arg8: memref<2x1x32xf32, #tpu.memory_space<vmem>>, %arg9: memref<32x32xf32, #tpu.memory_space<vmem>>, %arg10: memref<32x32xf32, #tpu.memory_space<vmem>>, %arg11: memref<1x32xf32, #tpu.memory_space<vmem>>, %arg12: memref<128x32xf32, #tpu.memory_space<vmem>>, %arg13: memref<1x128xf32, #tpu.memory_space<vmem>>, %arg14: memref<8x128xf32, #tpu.memory_space<vmem>>, %arg15: memref<2x8x32xf32, #tpu.memory_space<vmem>>) attributes {dimension_semantics = [], scalar_prefetch = 0 : i64, scratch_operands = 0 : i64, tpu.core_type = #tpu.core_type<tc>} {
    %c0 = arith.constant 0 : index
    %c0_0 = arith.constant 0 : index
    %0 = vector.load %arg0[%c0, %c0_0] : memref<8x1xi32, #tpu.memory_space<vmem>>, vector<8x1xi32>
    %1 = tpu.iota {dimensions = array<i32: 1>} : vector<8x128xi32>
    %2 = vector.broadcast %0 : vector<8x1xi32> to vector<8x128xi32>
    %3 = arith.cmpi eq, %2, %1 : vector<8x128xi32>
    %4 = arith.extui %3 : vector<8x128xi1> to vector<8x128xi32>
    %5 = arith.sitofp %4 : vector<8x128xi32> to vector<8x128xf32>
    %c0_1 = arith.constant 0 : index
    %c0_2 = arith.constant 0 : index
    %6 = vector.load %arg1[%c0_1, %c0_2] : memref<128x32xf32, #tpu.memory_space<vmem>>, vector<128x32xf32>
    %cst = arith.constant dense<0.000000e+00> : vector<8x32xf32>
    %7 = tpu.matmul %5, %6, %cst {dimension_numbers = #tpu.dot_dimension_numbers<[1], [0], [0], [1], [0, 0, 1, 1], [], []>} : vector<8x128xf32>, vector<128x32xf32>, vector<8x32xf32> -> vector<8x32xf32>
    %c0_3 = arith.constant 0 : index
    %c0_4 = arith.constant 0 : index
    %c0_5 = arith.constant 0 : index
    %8 = vector.load %arg2[%c0_3, %c0_4, %c0_5] : memref<2x8x32xf32, #tpu.memory_space<vmem>>, vector<1x8x32xf32>
    %9 = vector.shape_cast %8 : vector<1x8x32xf32> to vector<8x32xf32>
    %c0_6 = arith.constant 0 : index
    %c0_7 = arith.constant 0 : index
    %c0_8 = arith.constant 0 : index
    %c0_9 = arith.constant 0 : index
    %10 = vector.load %arg4[%c0_6, %c0_7, %c0_8, %c0_9] : memref<2x3x32x32xf32, #tpu.memory_space<vmem>>, vector<1x1x32x32xf32>
    %11 = vector.shape_cast %10 : vector<1x1x32x32xf32> to vector<32x32xf32>
    %cst_10 = arith.constant dense<0.000000e+00> : vector<8x32xf32>
    %12 = tpu.matmul %7, %11, %cst_10 {dimension_numbers = #tpu.dot_dimension_numbers<[1], [1], [0], [0], [0, 0, 1, 0], [], []>} : vector<8x32xf32>, vector<32x32xf32>, vector<8x32xf32> -> vector<8x32xf32>
    %c0_11 = arith.constant 0 : index
    %c1 = arith.constant 1 : index
    %c0_12 = arith.constant 0 : index
    %c0_13 = arith.constant 0 : index
    %13 = vector.load %arg4[%c0_11, %c1, %c0_12, %c0_13] : memref<2x3x32x32xf32, #tpu.memory_space<vmem>>, vector<1x1x32x32xf32>
    %14 = vector.shape_cast %13 : vector<1x1x32x32xf32> to vector<32x32xf32>
    %cst_14 = arith.constant dense<0.000000e+00> : vector<8x32xf32>
    %15 = tpu.matmul %7, %14, %cst_14 {dimension_numbers = #tpu.dot_dimension_numbers<[1], [1], [0], [0], [0, 0, 1, 0], [], []>} : vector<8x32xf32>, vector<32x32xf32>, vector<8x32xf32> -> vector<8x32xf32>
    %c0_15 = arith.constant 0 : index
    %c2 = arith.constant 2 : index
    %c0_16 = arith.constant 0 : index
    %c0_17 = arith.constant 0 : index
    %16 = vector.load %arg4[%c0_15, %c2, %c0_16, %c0_17] : memref<2x3x32x32xf32, #tpu.memory_space<vmem>>, vector<1x1x32x32xf32>
    %17 = vector.shape_cast %16 : vector<1x1x32x32xf32> to vector<32x32xf32>
    %cst_18 = arith.constant dense<0.000000e+00> : vector<8x32xf32>
    %18 = tpu.matmul %7, %17, %cst_18 {dimension_numbers = #tpu.dot_dimension_numbers<[1], [1], [0], [0], [0, 0, 1, 0], [], []>} : vector<8x32xf32>, vector<32x32xf32>, vector<8x32xf32> -> vector<8x32xf32>
    %c0_19 = arith.constant 0 : index
    %c0_20 = arith.constant 0 : index
    %c0_21 = arith.constant 0 : index
    %c0_22 = arith.constant 0 : index
    %19 = vector.load %arg5[%c0_19, %c0_20, %c0_21, %c0_22] : memref<2x3x32x32xf32, #tpu.memory_space<vmem>>, vector<1x1x32x32xf32>
    %20 = vector.shape_cast %19 : vector<1x1x32x32xf32> to vector<32x32xf32>
    %cst_23 = arith.constant dense<0.000000e+00> : vector<8x32xf32>
    %21 = tpu.matmul %9, %20, %cst_23 {dimension_numbers = #tpu.dot_dimension_numbers<[1], [1], [0], [0], [0, 0, 1, 0], [], []>} : vector<8x32xf32>, vector<32x32xf32>, vector<8x32xf32> -> vector<8x32xf32>
    %c0_24 = arith.constant 0 : index
    %c1_25 = arith.constant 1 : index
    %c0_26 = arith.constant 0 : index
    %c0_27 = arith.constant 0 : index
    %22 = vector.load %arg5[%c0_24, %c1_25, %c0_26, %c0_27] : memref<2x3x32x32xf32, #tpu.memory_space<vmem>>, vector<1x1x32x32xf32>
    %23 = vector.shape_cast %22 : vector<1x1x32x32xf32> to vector<32x32xf32>
    %cst_28 = arith.constant dense<0.000000e+00> : vector<8x32xf32>
    %24 = tpu.matmul %9, %23, %cst_28 {dimension_numbers = #tpu.dot_dimension_numbers<[1], [1], [0], [0], [0, 0, 1, 0], [], []>} : vector<8x32xf32>, vector<32x32xf32>, vector<8x32xf32> -> vector<8x32xf32>
    %c0_29 = arith.constant 0 : index
    %c2_30 = arith.constant 2 : index
    %c0_31 = arith.constant 0 : index
    %c0_32 = arith.constant 0 : index
    %25 = vector.load %arg5[%c0_29, %c2_30, %c0_31, %c0_32] : memref<2x3x32x32xf32, #tpu.memory_space<vmem>>, vector<1x1x32x32xf32>
    %26 = vector.shape_cast %25 : vector<1x1x32x32xf32> to vector<32x32xf32>
    %cst_33 = arith.constant dense<0.000000e+00> : vector<8x32xf32>
    %27 = tpu.matmul %9, %26, %cst_33 {dimension_numbers = #tpu.dot_dimension_numbers<[1], [1], [0], [0], [0, 0, 1, 0], [], []>} : vector<8x32xf32>, vector<32x32xf32>, vector<8x32xf32> -> vector<8x32xf32>
    %28 = arith.addf %12, %21 : vector<8x32xf32>
    %c0_34 = arith.constant 0 : index
    %c0_35 = arith.constant 0 : index
    %c0_36 = arith.constant 0 : index
    %c0_37 = arith.constant 0 : index
    %29 = vector.load %arg6[%c0_34, %c0_35, %c0_36, %c0_37] : memref<2x2x1x32xf32, #tpu.memory_space<vmem>>, vector<1x1x1x32xf32>
    %30 = vector.shape_cast %29 : vector<1x1x1x32xf32> to vector<1x32xf32>
    %31 = vector.broadcast %30 : vector<1x32xf32> to vector<8x32xf32>
    %32 = arith.addf %28, %31 : vector<8x32xf32>
    %33 = arith.negf %32 : vector<8x32xf32>
    %34 = math.exp %33 : vector<8x32xf32>
    %cst_38 = arith.constant 1.000000e+00 : f32
    %35 = vector.broadcast %cst_38 : f32 to vector<8x32xf32>
    %36 = arith.addf %35, %34 : vector<8x32xf32>
    %37 = arith.divf %35, %36 : vector<8x32xf32>
    %38 = arith.addf %15, %24 : vector<8x32xf32>
    %c0_39 = arith.constant 0 : index
    %c1_40 = arith.constant 1 : index
    %c0_41 = arith.constant 0 : index
    %c0_42 = arith.constant 0 : index
    %39 = vector.load %arg6[%c0_39, %c1_40, %c0_41, %c0_42] : memref<2x2x1x32xf32, #tpu.memory_space<vmem>>, vector<1x1x1x32xf32>
    %40 = vector.shape_cast %39 : vector<1x1x1x32xf32> to vector<1x32xf32>
    %41 = vector.broadcast %40 : vector<1x32xf32> to vector<8x32xf32>
    %42 = arith.addf %38, %41 : vector<8x32xf32>
    %43 = arith.negf %42 : vector<8x32xf32>
    %44 = math.exp %43 : vector<8x32xf32>
    %cst_43 = arith.constant 1.000000e+00 : f32
    %45 = vector.broadcast %cst_43 : f32 to vector<8x32xf32>
    %46 = arith.addf %45, %44 : vector<8x32xf32>
    %47 = arith.divf %45, %46 : vector<8x32xf32>
    %c0_44 = arith.constant 0 : index
    %c0_45 = arith.constant 0 : index
    %c0_46 = arith.constant 0 : index
    %48 = vector.load %arg7[%c0_44, %c0_45, %c0_46] : memref<2x1x32xf32, #tpu.memory_space<vmem>>, vector<1x1x32xf32>
    %49 = vector.shape_cast %48 : vector<1x1x32xf32> to vector<1x32xf32>
    %50 = vector.broadcast %49 : vector<1x32xf32> to vector<8x32xf32>
    %51 = arith.addf %18, %50 : vector<8x32xf32>
    %c0_47 = arith.constant 0 : index
    %c0_48 = arith.constant 0 : index
    %c0_49 = arith.constant 0 : index
    %52 = vector.load %arg8[%c0_47, %c0_48, %c0_49] : memref<2x1x32xf32, #tpu.memory_space<vmem>>, vector<1x1x32xf32>
    %53 = vector.shape_cast %52 : vector<1x1x32xf32> to vector<1x32xf32>
    %54 = vector.broadcast %53 : vector<1x32xf32> to vector<8x32xf32>
    %55 = arith.addf %27, %54 : vector<8x32xf32>
    %56 = arith.mulf %37, %55 : vector<8x32xf32>
    %57 = arith.addf %51, %56 : vector<8x32xf32>
    %58 = math.tanh %57 : vector<8x32xf32>
    %cst_50 = arith.constant 1.000000e+00 : f32
    %59 = vector.broadcast %cst_50 : f32 to vector<8x32xf32>
    %60 = arith.subf %59, %47 : vector<8x32xf32>
    %61 = arith.mulf %60, %58 : vector<8x32xf32>
    %62 = arith.mulf %47, %9 : vector<8x32xf32>
    %63 = arith.addf %61, %62 : vector<8x32xf32>
    %c0_51 = arith.constant 0 : index
    %c0_52 = arith.constant 0 : index
    %c0_53 = arith.constant 0 : index
    %64 = vector.load %arg15[%c0_51, %c0_52, %c0_53] : memref<2x8x32xf32, #tpu.memory_space<vmem>>, vector<1x8x32xf32>
    %65 = vector.shape_cast %64 : vector<1x8x32xf32> to vector<8x32xf32>
    %66 = vector.shape_cast %63 : vector<8x32xf32> to vector<1x8x32xf32>
    tpu.vector_store %arg15[%c0_51, %c0_52, %c0_53], %66 {strides = array<i32>} : memref<2x8x32xf32, #tpu.memory_space<vmem>>, vector<1x8x32xf32>,
    %c1_54 = arith.constant 1 : index
    %c0_55 = arith.constant 0 : index
    %c0_56 = arith.constant 0 : index
    %67 = vector.load %arg2[%c1_54, %c0_55, %c0_56] : memref<2x8x32xf32, #tpu.memory_space<vmem>>, vector<1x8x32xf32>
    %68 = vector.shape_cast %67 : vector<1x8x32xf32> to vector<8x32xf32>
    %c1_57 = arith.constant 1 : index
    %c0_58 = arith.constant 0 : index
    %c0_59 = arith.constant 0 : index
    %c0_60 = arith.constant 0 : index
    %69 = vector.load %arg4[%c1_57, %c0_58, %c0_59, %c0_60] : memref<2x3x32x32xf32, #tpu.memory_space<vmem>>, vector<1x1x32x32xf32>
    %70 = vector.shape_cast %69 : vector<1x1x32x32xf32> to vector<32x32xf32>
    %cst_61 = arith.constant dense<0.000000e+00> : vector<8x32xf32>
    %71 = tpu.matmul %63, %70, %cst_61 {dimension_numbers = #tpu.dot_dimension_numbers<[1], [1], [0], [0], [0, 0, 1, 0], [], []>} : vector<8x32xf32>, vector<32x32xf32>, vector<8x32xf32> -> vector<8x32xf32>
    %c1_62 = arith.constant 1 : index
    %c1_63 = arith.constant 1 : index
    %c0_64 = arith.constant 0 : index
    %c0_65 = arith.constant 0 : index
    %72 = vector.load %arg4[%c1_62, %c1_63, %c0_64, %c0_65] : memref<2x3x32x32xf32, #tpu.memory_space<vmem>>, vector<1x1x32x32xf32>
    %73 = vector.shape_cast %72 : vector<1x1x32x32xf32> to vector<32x32xf32>
    %cst_66 = arith.constant dense<0.000000e+00> : vector<8x32xf32>
    %74 = tpu.matmul %63, %73, %cst_66 {dimension_numbers = #tpu.dot_dimension_numbers<[1], [1], [0], [0], [0, 0, 1, 0], [], []>} : vector<8x32xf32>, vector<32x32xf32>, vector<8x32xf32> -> vector<8x32xf32>
    %c1_67 = arith.constant 1 : index
    %c2_68 = arith.constant 2 : index
    %c0_69 = arith.constant 0 : index
    %c0_70 = arith.constant 0 : index
    %75 = vector.load %arg4[%c1_67, %c2_68, %c0_69, %c0_70] : memref<2x3x32x32xf32, #tpu.memory_space<vmem>>, vector<1x1x32x32xf32>
    %76 = vector.shape_cast %75 : vector<1x1x32x32xf32> to vector<32x32xf32>
    %cst_71 = arith.constant dense<0.000000e+00> : vector<8x32xf32>
    %77 = tpu.matmul %63, %76, %cst_71 {dimension_numbers = #tpu.dot_dimension_numbers<[1], [1], [0], [0], [0, 0, 1, 0], [], []>} : vector<8x32xf32>, vector<32x32xf32>, vector<8x32xf32> -> vector<8x32xf32>
    %c1_72 = arith.constant 1 : index
    %c0_73 = arith.constant 0 : index
    %c0_74 = arith.constant 0 : index
    %c0_75 = arith.constant 0 : index
    %78 = vector.load %arg5[%c1_72, %c0_73, %c0_74, %c0_75] : memref<2x3x32x32xf32, #tpu.memory_space<vmem>>, vector<1x1x32x32xf32>
    %79 = vector.shape_cast %78 : vector<1x1x32x32xf32> to vector<32x32xf32>
    %cst_76 = arith.constant dense<0.000000e+00> : vector<8x32xf32>
    %80 = tpu.matmul %68, %79, %cst_76 {dimension_numbers = #tpu.dot_dimension_numbers<[1], [1], [0], [0], [0, 0, 1, 0], [], []>} : vector<8x32xf32>, vector<32x32xf32>, vector<8x32xf32> -> vector<8x32xf32>
    %c1_77 = arith.constant 1 : index
    %c1_78 = arith.constant 1 : index
    %c0_79 = arith.constant 0 : index
    %c0_80 = arith.constant 0 : index
    %81 = vector.load %arg5[%c1_77, %c1_78, %c0_79, %c0_80] : memref<2x3x32x32xf32, #tpu.memory_space<vmem>>, vector<1x1x32x32xf32>
    %82 = vector.shape_cast %81 : vector<1x1x32x32xf32> to vector<32x32xf32>
    %cst_81 = arith.constant dense<0.000000e+00> : vector<8x32xf32>
    %83 = tpu.matmul %68, %82, %cst_81 {dimension_numbers = #tpu.dot_dimension_numbers<[1], [1], [0], [0], [0, 0, 1, 0], [], []>} : vector<8x32xf32>, vector<32x32xf32>, vector<8x32xf32> -> vector<8x32xf32>
    %c1_82 = arith.constant 1 : index
    %c2_83 = arith.constant 2 : index
    %c0_84 = arith.constant 0 : index
    %c0_85 = arith.constant 0 : index
    %84 = vector.load %arg5[%c1_82, %c2_83, %c0_84, %c0_85] : memref<2x3x32x32xf32, #tpu.memory_space<vmem>>, vector<1x1x32x32xf32>
    %85 = vector.shape_cast %84 : vector<1x1x32x32xf32> to vector<32x32xf32>
    %cst_86 = arith.constant dense<0.000000e+00> : vector<8x32xf32>
    %86 = tpu.matmul %68, %85, %cst_86 {dimension_numbers = #tpu.dot_dimension_numbers<[1], [1], [0], [0], [0, 0, 1, 0], [], []>} : vector<8x32xf32>, vector<32x32xf32>, vector<8x32xf32> -> vector<8x32xf32>
    %87 = arith.addf %71, %80 : vector<8x32xf32>
    %c1_87 = arith.constant 1 : index
    %c0_88 = arith.constant 0 : index
    %c0_89 = arith.constant 0 : index
    %c0_90 = arith.constant 0 : index
    %88 = vector.load %arg6[%c1_87, %c0_88, %c0_89, %c0_90] : memref<2x2x1x32xf32, #tpu.memory_space<vmem>>, vector<1x1x1x32xf32>
    %89 = vector.shape_cast %88 : vector<1x1x1x32xf32> to vector<1x32xf32>
    %90 = vector.broadcast %89 : vector<1x32xf32> to vector<8x32xf32>
    %91 = arith.addf %87, %90 : vector<8x32xf32>
    %92 = arith.negf %91 : vector<8x32xf32>
    %93 = math.exp %92 : vector<8x32xf32>
    %cst_91 = arith.constant 1.000000e+00 : f32
    %94 = vector.broadcast %cst_91 : f32 to vector<8x32xf32>
    %95 = arith.addf %94, %93 : vector<8x32xf32>
    %96 = arith.divf %94, %95 : vector<8x32xf32>
    %97 = arith.addf %74, %83 : vector<8x32xf32>
    %c1_92 = arith.constant 1 : index
    %c1_93 = arith.constant 1 : index
    %c0_94 = arith.constant 0 : index
    %c0_95 = arith.constant 0 : index
    %98 = vector.load %arg6[%c1_92, %c1_93, %c0_94, %c0_95] : memref<2x2x1x32xf32, #tpu.memory_space<vmem>>, vector<1x1x1x32xf32>
    %99 = vector.shape_cast %98 : vector<1x1x1x32xf32> to vector<1x32xf32>
    %100 = vector.broadcast %99 : vector<1x32xf32> to vector<8x32xf32>
    %101 = arith.addf %97, %100 : vector<8x32xf32>
    %102 = arith.negf %101 : vector<8x32xf32>
    %103 = math.exp %102 : vector<8x32xf32>
    %cst_96 = arith.constant 1.000000e+00 : f32
    %104 = vector.broadcast %cst_96 : f32 to vector<8x32xf32>
    %105 = arith.addf %104, %103 : vector<8x32xf32>
    %106 = arith.divf %104, %105 : vector<8x32xf32>
    %c1_97 = arith.constant 1 : index
    %c0_98 = arith.constant 0 : index
    %c0_99 = arith.constant 0 : index
    %107 = vector.load %arg7[%c1_97, %c0_98, %c0_99] : memref<2x1x32xf32, #tpu.memory_space<vmem>>, vector<1x1x32xf32>
    %108 = vector.shape_cast %107 : vector<1x1x32xf32> to vector<1x32xf32>
    %109 = vector.broadcast %108 : vector<1x32xf32> to vector<8x32xf32>
    %110 = arith.addf %77, %109 : vector<8x32xf32>
    %c1_100 = arith.constant 1 : index
    %c0_101 = arith.constant 0 : index
    %c0_102 = arith.constant 0 : index
    %111 = vector.load %arg8[%c1_100, %c0_101, %c0_102] : memref<2x1x32xf32, #tpu.memory_space<vmem>>, vector<1x1x32xf32>
    %112 = vector.shape_cast %111 : vector<1x1x32xf32> to vector<1x32xf32>
    %113 = vector.broadcast %112 : vector<1x32xf32> to vector<8x32xf32>
    %114 = arith.addf %86, %113 : vector<8x32xf32>
    %115 = arith.mulf %96, %114 : vector<8x32xf32>
    %116 = arith.addf %110, %115 : vector<8x32xf32>
    %117 = math.tanh %116 : vector<8x32xf32>
    %cst_103 = arith.constant 1.000000e+00 : f32
    %118 = vector.broadcast %cst_103 : f32 to vector<8x32xf32>
    %119 = arith.subf %118, %106 : vector<8x32xf32>
    %120 = arith.mulf %119, %117 : vector<8x32xf32>
    %121 = arith.mulf %106, %68 : vector<8x32xf32>
    %122 = arith.addf %120, %121 : vector<8x32xf32>
    %c1_104 = arith.constant 1 : index
    %c0_105 = arith.constant 0 : index
    %c0_106 = arith.constant 0 : index
    %123 = vector.load %arg15[%c1_104, %c0_105, %c0_106] : memref<2x8x32xf32, #tpu.memory_space<vmem>>, vector<1x8x32xf32>
    %124 = vector.shape_cast %123 : vector<1x8x32xf32> to vector<8x32xf32>
    %125 = vector.shape_cast %122 : vector<8x32xf32> to vector<1x8x32xf32>
    tpu.vector_store %arg15[%c1_104, %c0_105, %c0_106], %125 {strides = array<i32>} : memref<2x8x32xf32, #tpu.memory_space<vmem>>, vector<1x8x32xf32>,
    %c0_107 = arith.constant 0 : index
    %c0_108 = arith.constant 0 : index
    %c0_109 = arith.constant 0 : index
    %126 = vector.load %arg3[%c0_107, %c0_108, %c0_109] : memref<8x8x32xf32, #tpu.memory_space<vmem>>, vector<8x8x32xf32>
    %127 = vector.shape_cast %122 : vector<8x32xf32> to vector<8x1x32xf32>
    "tpu.trace_start"() <{level = 10 : i32, message = "bqh,bkh->bqk"}> : () -> ()
    %cst_110 = arith.constant dense<0.000000e+00> : vector<8x1x8xf32>
    %128 = tpu.matmul %127, %126, %cst_110 {dimension_numbers = #tpu.dot_dimension_numbers<[2], [2], [1], [1], [0, 0, 0, 1, 1, 1], [0], [0]>} : vector<8x1x32xf32>, vector<8x8x32xf32>, vector<8x1x8xf32> -> vector<8x1x8xf32>
    "tpu.trace_stop"() : () -> ()
    %cst_111 = arith.constant dense<0xFF800000> : vector<8x1xf32>
    %129 = vector.multi_reduction <maximumf>, %128, %cst_111 [2] : vector<8x1x8xf32> to vector<8x1xf32>
    %130 = vector.shape_cast %129 : vector<8x1xf32> to vector<8x1x1xf32>
    %131 = vector.broadcast %130 : vector<8x1x1xf32> to vector<8x1x8xf32>
    %132 = arith.subf %128, %131 : vector<8x1x8xf32>
    %133 = math.exp %132 : vector<8x1x8xf32>
    %cst_112 = arith.constant dense<0.000000e+00> : vector<8x1xf32>
    %134 = vector.multi_reduction <add>, %133, %cst_112 [2] : vector<8x1x8xf32> to vector<8x1xf32>
    %135 = vector.shape_cast %134 : vector<8x1xf32> to vector<8x1x1xf32>
    %136 = tpu.reciprocal %135 {approx = true} : vector<8x1x1xf32> -> vector<8x1x1xf32>
    %137 = vector.broadcast %136 : vector<8x1x1xf32> to vector<8x1x8xf32>
    %138 = arith.mulf %133, %137 : vector<8x1x8xf32>
    "tpu.trace_start"() <{level = 10 : i32, message = "bqk,bkh->bqh"}> : () -> ()
    %cst_113 = arith.constant dense<0.000000e+00> : vector<8x1x32xf32>
    %139 = tpu.matmul %138, %126, %cst_113 {dimension_numbers = #tpu.dot_dimension_numbers<[2], [1], [1], [2], [0, 0, 0, 1, 1, 2], [0], [0]>} : vector<8x1x8xf32>, vector<8x8x32xf32>, vector<8x1x32xf32> -> vector<8x1x32xf32>
    "tpu.trace_stop"() : () -> ()
    %140 = vector.shape_cast %139 : vector<8x1x32xf32> to vector<8x32xf32>
    %c0_114 = arith.constant 0 : index
    %c0_115 = arith.constant 0 : index
    %141 = vector.load %arg9[%c0_114, %c0_115] : memref<32x32xf32, #tpu.memory_space<vmem>>, vector<32x32xf32>
    %cst_116 = arith.constant dense<0.000000e+00> : vector<8x32xf32>
    %142 = tpu.matmul %122, %141, %cst_116 {dimension_numbers = #tpu.dot_dimension_numbers<[1], [1], [0], [0], [0, 0, 1, 0], [], []>} : vector<8x32xf32>, vector<32x32xf32>, vector<8x32xf32> -> vector<8x32xf32>
    %c0_117 = arith.constant 0 : index
    %c0_118 = arith.constant 0 : index
    %143 = vector.load %arg10[%c0_117, %c0_118] : memref<32x32xf32, #tpu.memory_space<vmem>>, vector<32x32xf32>
    %cst_119 = arith.constant dense<0.000000e+00> : vector<8x32xf32>
    %144 = tpu.matmul %140, %143, %cst_119 {dimension_numbers = #tpu.dot_dimension_numbers<[1], [1], [0], [0], [0, 0, 1, 0], [], []>} : vector<8x32xf32>, vector<32x32xf32>, vector<8x32xf32> -> vector<8x32xf32>
    %145 = arith.addf %142, %144 : vector<8x32xf32>
    %c0_120 = arith.constant 0 : index
    %c0_121 = arith.constant 0 : index
    %146 = vector.load %arg11[%c0_120, %c0_121] : memref<1x32xf32, #tpu.memory_space<vmem>>, vector<1x32xf32>
    %147 = vector.broadcast %146 : vector<1x32xf32> to vector<8x32xf32>
    %148 = arith.addf %145, %147 : vector<8x32xf32>
    %149 = math.tanh %148 : vector<8x32xf32>
    %c0_122 = arith.constant 0 : index
    %c0_123 = arith.constant 0 : index
    %150 = vector.load %arg12[%c0_122, %c0_123] : memref<128x32xf32, #tpu.memory_space<vmem>>, vector<128x32xf32>
    %cst_124 = arith.constant dense<0.000000e+00> : vector<8x128xf32>
    %151 = tpu.matmul %149, %150, %cst_124 {dimension_numbers = #tpu.dot_dimension_numbers<[1], [1], [0], [0], [0, 0, 1, 0], [], []>} : vector<8x32xf32>, vector<128x32xf32>, vector<8x128xf32> -> vector<8x128xf32>
    %c0_125 = arith.constant 0 : index
    %c0_126 = arith.constant 0 : index
    %152 = vector.load %arg13[%c0_125, %c0_126] : memref<1x128xf32, #tpu.memory_space<vmem>>, vector<1x128xf32>
    %153 = vector.broadcast %152 : vector<1x128xf32> to vector<8x128xf32>
    %154 = arith.addf %151, %153 : vector<8x128xf32>
    %cst_127 = arith.constant dense<0xFF800000> : vector<8xf32>
    %155 = vector.multi_reduction <maximumf>, %154, %cst_127 [1] : vector<8x128xf32> to vector<8xf32>
    %156 = vector.shape_cast %155 : vector<8xf32> to vector<8x1xf32>
    %157 = vector.broadcast %156 : vector<8x1xf32> to vector<8x128xf32>
    %158 = arith.subf %154, %157 : vector<8x128xf32>
    %159 = math.exp %158 : vector<8x128xf32>
    %cst_128 = arith.constant dense<0.000000e+00> : vector<8xf32>
    %160 = vector.multi_reduction <add>, %159, %cst_128 [1] : vector<8x128xf32> to vector<8xf32>
    %161 = vector.shape_cast %160 : vector<8xf32> to vector<8x1xf32>
    %162 = tpu.reciprocal %161 {approx = true} : vector<8x1xf32> -> vector<8x1xf32>
    %163 = vector.broadcast %162 : vector<8x1xf32> to vector<8x128xf32>
    %164 = arith.mulf %159, %163 : vector<8x128xf32>
    %c0_129 = arith.constant 0 : index
    %c0_130 = arith.constant 0 : index
    %165 = vector.load %arg14[%c0_129, %c0_130] : memref<8x128xf32, #tpu.memory_space<vmem>>, vector<8x128xf32>
    tpu.vector_store %arg14[%c0_129, %c0_130], %164 {strides = array<i32>} : memref<8x128xf32, #tpu.memory_space<vmem>>, vector<8x128xf32>,
    return
  }
}

</mosaic_0001>

<bundles_post_ra>
// kernel: decoder_rnn_forward.1
= control target key start
LH: loop header
LB: loop body
LE: loop exit
PB: predicated region body
PF: predicated region fallthrough
CT: control target
= control target key end

     0   :  { %21 = vsyncpa [#allocation3], 0  ;;  %s4760_s0 = inlined_call_operand.vmem [shape: s32[8,1], index: 0, kind: input, shape index: {}]   ;;  %s4761_s1 = inlined_call_operand.vmem [shape: f32[128,32], index: 1, kind: input, shape index: {}]   ;;  %s4762_s2 = inlined_call_operand.hbm [shape: f32[2,8,32], index: 2, kind: input, shape index: {}, may-alias: {2,15}]   ;;  %s4763_s3 = inlined_call_operand.vmem [shape: f32[8,8,32], index: 3, kind: input, shape index: {}]   ;;  %s4764_s4 = inlined_call_operand.vmem [shape: f32[2,3,32,32], index: 4, kind: input, shape index: {}]   ;;  %s4765_s5 = inlined_call_operand.vmem [shape: f32[2,3,32,32], index: 5, kind: input, shape index: {}]   ;;  %s4766_s6 = inlined_call_operand.hbm [shape: f32[2,2,1,32], index: 6, kind: input, shape index: {}]   ;;  %s4767_s7 = inlined_call_operand.hbm [shape: f32[2,1,32], index: 7, kind: input, shape index: {}]   ;;  %s4768_s8 = inlined_call_operand.hbm [shape: f32[2,1,32], index: 8, kind: input, shape index: {}]   ;;  %s4769_s9 = inlined_call_operand.vmem [shape: f32[32,32], index: 9, kind: input, shape index: {}]   ;;  %s4770_s10 = inlined_call_operand.vmem [shape: f32[32,32], index: 10, kind: input, shape index: {}]   ;;  %s4771_s11 = inlined_call_operand.hbm [shape: f32[1,32], index: 11, kind: input, shape index: {}]   ;;  %s4772_s12 = inlined_call_operand.vmem [shape: f32[128,32], index: 12, kind: input, shape index: {}]   ;;  %s4773_s13 = inlined_call_operand.hbm [shape: f32[1,128], index: 13, kind: input, shape index: {}]   ;;  %s4774_s14 = inlined_call_operand.hbm [shape: f32[8,128], index: 14, kind: output, shape index: {0}]   ;;  %s4775_s15 = inlined_call_operand.hbm [shape: f32[2,8,32], index: 15, kind: output, shape index: {1}, may-alias: {2,15}]  }
   0x1   :  { %22 = vsyncpa [#allocation6], 0 }
   0x2   :  { %23 = vsyncpa [#allocation9], 0 }
   0x3   :  { %24 = vsyncpa [#allocation12], 0 }
   0x4   :  { %25 = vsyncpa [#allocation4], 0 }
   0x5   :  { %26 = vsyncpa [#allocation15], 0  ;;  %s3977_s18 = smov [#allocation5]  }
   0x6   :  { %s54_s19 = sshll.u32 %s3977_s18, 4  ;;  %s55_s19 = int_to_ptr.vmem [resolvable:$true] %s54_s19 }
   0x7   :  { %s3813_s20 = scalar_lea.vmem %s55_s19, 64  ;;  %p3818_p1 = scmp.lt.s32.totalorder %s55_s19, %s55_s19 }
   0x8   :  { %p3814_p0 = scmp.ne.s32.totalorder %s55_s19, %s3813_s20  ;;  %p3819_p2 = scmp.lt.s32.totalorder %s3813_s20, %s3813_s20 }
   0xa   :  { %p3820_p3 = por %p3819_p2, %p3818_p1 }
   0xc   :  { %p3821_p4 = pnand %p3820_p3, %p3814_p0 }
   0xe   :  { %3824 = shalt.err (!%p3821_p4)
}
   0xf   :  { %s3978_s21 = smov 16   ;;  %s3979_s22 = smov 1  }
  0x10   :  { %60 = dma.hbm_to_vmem [thread:$0]  %s4766_s6, 64, %s55_s19, [#allocation6], %s3978_s21, %s3978_s21, %s3979_s22  }
  0x11   :  { %s3980_s25 = smov [#allocation8]   ;;  %s3981_s27 = smov [#allocation2]  }
  0x12   :  { %s78_s26 = sshll.u32 %s3980_s25, 4  ;;  %s36_s28 = sshll.u32 %s3981_s27, 4  ;;  %s79_s26 = int_to_ptr.vmem [resolvable:$true] %s78_s26  ;;  %s37_s28 = int_to_ptr.vmem [resolvable:$true] %s36_s28 }
  0x13   :  { %s3833_s29 = scalar_lea.vmem %s79_s26, 32  ;;  %p3838_p6 = scmp.lt.s32.totalorder %s79_s26, %s79_s26 }
  0x14   :  { %p3834_p5 = scmp.ne.s32.totalorder %s79_s26, %s3833_s29  ;;  %p3839_p7 = scmp.lt.s32.totalorder %s3833_s29, %s3833_s29 }
  0x16   :  { %p3840_p8 = por %p3839_p7, %p3838_p6 }
  0x18   :  { %p3841_p9 = pnand %p3840_p8, %p3834_p5 }
  0x1a   :  { %3844 = shalt.err (!%p3841_p9)
}
  0x1b   :  { %84 = dma.hbm_to_vmem [thread:$0]  %s4768_s8, 32, %s79_s26, [#allocation9], %s3978_s21, %s3978_s21, %s3979_s22  }
  0x1c   :  { %s3853_s6 = scalar_lea.vmem %s37_s28, 256  ;;  %p3858_p11 = scmp.lt.s32.totalorder %s37_s28, %s37_s28 }
  0x1d   :  { %p3854_p10 = scmp.ne.s32.totalorder %s37_s28, %s3853_s6  ;;  %p3859_p12 = scmp.lt.s32.totalorder %s3853_s6, %s3853_s6 }
  0x1f   :  { %p3860_p13 = por %p3859_p12, %p3858_p11 }
  0x21   :  { %p3861_p0 = pnand %p3860_p13, %p3854_p10 }
  0x23   :  { %3864 = shalt.err (!%p3861_p0)
}
  0x24   :  { %s3982_s17 = smov 128   ;;  %s3983_s18 = smov 8  }
  0x25   :  { %42 = dma.hbm_to_vmem [thread:$0]  %s4762_s2, 256, %s37_s28, [#allocation3], %s3982_s17, %s3982_s17, %s3983_s18  }
  0x26   :  { %s3984_s23 = smov [#allocation7]   ;;  %s3985_s8 = smov [#allocation10]  }
  0x27   :  { %s66_s24 = sshll.u32 %s3984_s23, 4  ;;  %s95_s25 = sshll.u32 %s3985_s8, 4  ;;  %s67_s24 = int_to_ptr.vmem [resolvable:$true] %s66_s24  ;;  %s96_s25 = int_to_ptr.vmem [resolvable:$true] %s95_s25 }
  0x28   :  { %s3873_s26 = scalar_lea.vmem %s67_s24, 32  ;;  %p3878_p2 = scmp.lt.s32.totalorder %s67_s24, %s67_s24 }
  0x29   :  { %p3874_p1 = scmp.ne.s32.totalorder %s67_s24, %s3873_s26  ;;  %p3879_p3 = scmp.lt.s32.totalorder %s3873_s26, %s3873_s26 }
  0x2b   :  { %p3880_p4 = por %p3879_p3, %p3878_p2 }
  0x2d   :  { %p3881_p5 = pnand %p3880_p4, %p3874_p1 }
  0x2f   :  { %3884 = shalt.err (!%p3881_p5)
}
  0x30   :  { %72 = dma.hbm_to_vmem [thread:$0]  %s4767_s7, 32, %s67_s24, [#allocation6], %s3978_s21, %s3978_s21, %s3979_s22  }
  0x31   :  { %s3893_s2 = scalar_lea.vmem %s96_s25, 16  ;;  %s3897_s28 = scalar_lea.vmem %s96_s25, 32 }
  0x32   :  { %p3894_p6 = scmp.ne.s32.totalorder %s96_s25, %s3893_s2  ;;  %p3898_p7 = scmp.lt.s32.totalorder %s96_s25, %s96_s25 }
  0x33   :  { %p3899_p8 = scmp.lt.s32.totalorder %s3897_s28, %s3893_s2 }
  0x35   :  { %p3900_p9 = por %p3899_p8, %p3898_p7 }
  0x37   :  { %p3901_p10 = pnand %p3900_p9, %p3894_p6 }
  0x39   :  { %3904 = shalt.err (!%p3901_p10)
}
  0x3a   :  { %98 = dma.hbm_to_vmem [thread:$0]  %s4771_s11, 16, %s96_s25, [#allocation9]  }
  0x3b   :  { %s3986_s6 = smov [#allocation11]  }
  0x3c   :  { %s107_s19 = sshll.u32 %s3986_s6, 4  ;;  %s108_s19 = int_to_ptr.vmem [resolvable:$true] %s107_s19 }
  0x3d   :  { %s3913_s20 = scalar_lea.vmem %s108_s19, 16  ;;  %s3917_s23 = scalar_lea.vmem %s108_s19, 32 }
  0x3e   :  { %p3914_p11 = scmp.ne.s32.totalorder %s108_s19, %s3913_s20  ;;  %p3918_p12 = scmp.lt.s32.totalorder %s108_s19, %s108_s19 }
  0x3f   :  { %p3919_p13 = scmp.lt.s32.totalorder %s3917_s23, %s3913_s20 }
  0x41   :  { %p3920_p0 = por %p3919_p13, %p3918_p12 }
  0x43   :  { %p3921_p1 = pnand %p3920_p0, %p3914_p11 }
  0x45   :  { %3924 = shalt.err (!%p3921_p1)
}
  0x46   :  { %110 = dma.hbm_to_vmem [thread:$0]  %s4773_s13, 16, %s108_s19, [#allocation12]  }
  0x47   :  { %3965 = dma.done.wait [#allocation3], 256  }
  0x48   :  { %3966 = vsyncadd [#allocation3], 4294967040 }
  0x49   :  { %3967 = dma.done.wait [#allocation6], 96  }
  0x4a   :  { %3968 = vsyncadd [#allocation6], 4294967200 }
  0x4b   :  { %3969 = dma.done.wait [#allocation9], 48  }
  0x4c   :  { %3970 = vsyncadd [#allocation9], 4294967248 }
  0x4d   :  { %3971 = dma.done.wait [#allocation12], 16  }
  0x4e   :  { %3972 = vsyncadd [#allocation12], 4294967280  ;;  %v3987_v0 = vmov 0   ;;  %v3988_v1 = vmov 0.0   ;;  %vm3989_vm0 = vmmov 0   ;;  %v129_v2 = vld [vmem:[%s4760_s0] sm:$0xff]  ;;  %v130_v23 = vlaneseq }
  0x4f   :  { %3746 = vset.pattern.permute.xlu0 %v3987_v0  ;;  %3425 = vmatprep.subr.mxu1 %v3988_v1  ;;  %v153_v3 = vld [vmem:[%s4761_s1 + $0x78] sm:$0xff]  ;;  %v152_v4 = vld [vmem:[%s4761_s1 + $0x70] sm:$0xff]  ;;  %v151_v5 = vld [vmem:[%s4761_s1 + $0x68] sm:$0xff]  ;;  %vm243_vm1 = vcmask 261120   ;;  %v3990_v27 = vmov 1.0   ;;  %vm2046_vm3 = vcmask 57344  }
  0x50   :  { %3482 = vmatprep.subr.mxu0 %v3988_v1  ;;  %3457 = vmatprep.mubr.msk.f32.mxu1 %vm3989_vm0, %v3988_v1  ;;  %v150_v6 = vld [vmem:[%s4761_s1 + $0x60] sm:$0xff]  ;;  %v149_v7 = vld [vmem:[%s4761_s1 + $0x58] sm:$0xff]  ;;  %v148_v8 = vld [vmem:[%s4761_s1 + $0x50] sm:$0xff]  ;;  %v131_v24 = vand.u32 127, %v130_v23  ;;  %vm2135_vm4 = vcmask 64512   ;;  %vm2737_vm5 = vcmask 1041409  }
  0x51   :  { %3490 = vmatprep.mubr.msk.f32.mxu0 %vm3989_vm0, %v3988_v1  ;;  %133 = vperm.xlu0 %3746, %v129_v2   ;;  %v147_v9 = vld [vmem:[%s4761_s1 + $0x48] sm:$0xff]  ;;  %v146_v10 = vld [vmem:[%s4761_s1 + $0x40] sm:$0xff]  ;;  %v145_v11 = vld [vmem:[%s4761_s1 + $0x38] sm:$0xff]  ;;  %vm2740_vm6 = vcmask 1042434   ;;  %vm2743_vm7 = vcmask 1043459   ;;  %vm2746_vm8 = vcmask 1044484  }
  0x52   :  { %3426 = vmatpush3.msra.mxu1 %v153_v3  ;;  %v144_v12 = vld [vmem:[%s4761_s1 + $0x30] sm:$0xff]  ;;  %v143_v13 = vld [vmem:[%s4761_s1 + $0x28] sm:$0xff]  ;;  %v142_v14 = vld [vmem:[%s4761_s1 + $0x20] sm:$0xff]  ;;  %vm2749_vm9 = vcmask 1045509   ;;  %vm2752_vm10 = vcmask 1046534   ;;  %vm2755_vm11 = vcmask 1047559  }
  0x53   :  { %3427 = vmatprep.subr.mxu1 %v3988_v1  ;;  %v141_v15 = vld [vmem:[%s4761_s1 + $0x18] sm:$0xff]  ;;  %v140_v16 = vld [vmem:[%s4761_s1 + $0x10] sm:$0xff]  ;;  %v139_v17 = vld [vmem:[%s4761_s1 + $0x8] sm:$0xff] }
  0x54   :  { %3428 = vmatpush3.msra.mxu1 %v152_v4  ;;  %v228_v18 = vld [vmem:[%s4764_s4 + $0x18] sm:$0xff]  ;;  %v138_v19 = vld [vmem:[%s4761_s1] sm:$0xff]  ;;  %v227_v20 = vld [vmem:[%s4764_s4 + $0x10] sm:$0xff] }
  0x55   :  { %3429 = vmatprep.subr.mxu1 %v3988_v1  ;;  %3483 = vmatpush3.xpose.msk.msra.mxu0 %vm243_vm1, %v228_v18  ;;  %v226_v21 = vld [vmem:[%s4764_s4 + $0x8] sm:$0xff]  ;;  %v225_v22 = vld [vmem:[%s4764_s4] sm:$0xff]  ;;  %v242_v26 = vld [vmem:[%s4765_s5 + $0x18] sm:$0xff] }
  0x56   :  { %3430 = vmatpush3.msra.mxu1 %v151_v5  ;;  %3484 = vmatprep.subr.mxu0 %v3988_v1  ;;  %v241_v28 = vld [vmem:[%s4765_s5 + $0x10] sm:$0xff]  ;;  %v240_v29 = vld [vmem:[%s4765_s5 + $0x8] sm:$0xff]  ;;  %v239_v30 = vld [vmem:[%s4765_s5] sm:$0xff] }
  0x57   :  { %3431 = vmatprep.subr.mxu1 %v3988_v1  ;;  %v4219_v31 = vld [vmem:[#allocation2] sm:$0xff]  ;;  %v3140_v32 = vld [vmem:[%s4765_s5 + $0x38] sm:$0xff]  ;;  %v3139_v33 = vld [vmem:[%s4765_s5 + $0x30] sm:$0xff] }
  0x58   :  { %3432 = vmatpush3.msra.mxu1 %v150_v6  ;;  %v3138_v34 = vld [vmem:[%s4765_s5 + $0x28] sm:$0xff]  ;;  %v3137_v35 = vld [vmem:[%s4765_s5 + $0x20] sm:$0xff]  ;;  %v3127_v36 = vld [vmem:[%s4764_s4 + $0x38] sm:$0xff] }
  0x59   :  { %3433 = vmatprep.subr.mxu1 %v3988_v1  ;;  %3485 = vmatpush3.xpose.msk.msra.mxu0 %vm243_vm1, %v227_v20  ;;  %v3126_v37 = vld [vmem:[%s4764_s4 + $0x30] sm:$0xff]  ;;  %v3125_v38 = vld [vmem:[%s4764_s4 + $0x28] sm:$0xff]  ;;  %v3124_v39 = vld [vmem:[%s4764_s4 + $0x20] sm:$0xff] }
  0x5a   :  { %3434 = vmatpush3.msra.mxu1 %v149_v7  ;;  %3486 = vmatprep.subr.mxu0 %v3988_v1  ;;  %v3131_v40 = vld [vmem:[%s4764_s4 + $0x58] sm:$0xff]  ;;  %v3130_v44 = vld [vmem:[%s4764_s4 + $0x50] sm:$0xff]  ;;  %v3129_v46 = vld [vmem:[%s4764_s4 + $0x48] sm:$0xff] }
  0x5b   :  { %3435 = vmatprep.subr.mxu1 %v3988_v1  ;;  %v3149_v42 = vld [vmem:[%s4765_s5 + $0x58] sm:$0xff]  ;;  %v3148_v45 = vld [vmem:[%s4765_s5 + $0x50] sm:$0xff]  ;;  %v3147_v47 = vld [vmem:[%s4765_s5 + $0x48] sm:$0xff] }
  0x5c   :  { %3436 = vmatpush3.msra.mxu1 %v148_v8  ;;  %v3128_v48 = vld [vmem:[%s4764_s4 + $0x40] sm:$0xff]  ;;  %v3191_v54 = vld [vmem:[%s4765_s5 + $0x78] sm:$0xff]  ;;  %v3190_v56 = vld [vmem:[%s4765_s5 + $0x70] sm:$0xff] }
  0x5d   :  { %3437 = vmatprep.subr.mxu1 %v3988_v1  ;;  %3487 = vmatpush3.xpose.msk.msra.mxu0 %vm243_vm1, %v226_v21  ;;  %v3146_v49 = vld [vmem:[%s4765_s5 + $0x40] sm:$0xff]  ;;  %v3200_v55 = vld [vmem:[%s4765_s5 + $0x98] sm:$0xff]  ;;  %v3199_v57 = vld [vmem:[%s4765_s5 + $0x90] sm:$0xff] }
  0x5e   :  { %3438 = vmatpush3.msra.mxu1 %v147_v9  ;;  %3488 = vmatprep.subr.mxu0 %v3988_v1  ;;  %v3189_v58 = vld [vmem:[%s4765_s5 + $0x68] sm:$0xff]  ;;  %v3188_v60 = vld [vmem:[%s4765_s5 + $0x60] sm:$0xff]  ;;  %v3179_v63 = vld [vmem:[%s4764_s4 + $0x78] sm:$0xff] }
  0x5f   :  { %3439 = vmatprep.subr.mxu1 %v3988_v1  ;;  %v3198_v59 = vld [vmem:[%s4765_s5 + $0x88] sm:$0xff]  ;;  %v3197_v61 = vld [vmem:[%s4765_s5 + $0x80] sm:$0xff]  ;;  %v3183_v0 = vld [vmem:[%s4764_s4 + $0x98] sm:$0xff] }
  0x60   :  { %3440 = vmatpush3.msra.mxu1 %v146_v10  ;;  %v4365_v62 = vld [vmem:[#allocation2 + $0x8] sm:$0xff]  ;;  %v3178_v2 = vld [vmem:[%s4764_s4 + $0x70] sm:$0xff]  ;;  %v3176_v6 = vld [vmem:[%s4764_s4 + $0x60] sm:$0xff] }
  0x61   :  { %3441 = vmatprep.subr.mxu1 %v3988_v1  ;;  %3489 = vmatpush3.xpose.msk.msra.mxu0 %vm243_vm1, %v225_v22  ;;  %v3182_v3 = vld [vmem:[%s4764_s4 + $0x90] sm:$0xff]  ;;  %v3177_v4 = vld [vmem:[%s4764_s4 + $0x68] sm:$0xff]  ;;  %v3180_v7 = vld [vmem:[%s4764_s4 + $0x80] sm:$0xff] }
  0x62   :  { %3442 = vmatpush3.msra.mxu1 %v145_v11  ;;  %3504 = vmatprep.subr.mxu0 %v3988_v1  ;;  %v3181_v5 = vld [vmem:[%s4764_s4 + $0x88] sm:$0xff]  ;;  %v3155_v9 = vld [vmem:[#allocation5] ss:$0 sm:$0xff] }
  0x63   :  { %3443 = vmatprep.subr.mxu1 %v3988_v1 }
  0x64   :  { %3444 = vmatpush3.msra.mxu1 %v144_v12 }
  0x65   :  { %3445 = vmatprep.subr.mxu1 %v3988_v1 }
  0x66   :  { %3446 = vmatpush3.msra.mxu1 %v143_v13 }
  0x67   :  { %3447 = vmatprep.subr.mxu1 %v3988_v1 }
  0x68   :  { %3448 = vmatpush3.msra.mxu1 %v142_v14 }
  0x69   :  { %3449 = vmatprep.subr.mxu1 %v3988_v1 }
  0x6a   :  { %3450 = vmatpush3.msra.mxu1 %v141_v15 }
  0x6b   :  { %3451 = vmatprep.subr.mxu1 %v3988_v1 }
  0x6c   :  { %3452 = vmatpush3.msra.mxu1 %v140_v16 }
  0x6d   :  { %3453 = vmatprep.subr.mxu1 %v3988_v1 }
  0x6e   :  { %3454 = vmatpush3.msra.mxu1 %v139_v17  ;;  %v3162_v17 = vld [vmem:[#allocation5 + $0x1] ss:$0 sm:$0xff] }
  0x6f   :  { %3455 = vmatprep.subr.mxu1 %v3988_v1 }
  0x70   :  { %3456 = vmatpush3.msra.mxu1 %v138_v19 }
  0x71   :  { %3460 = vmatprep.subr.mxu1 %v3988_v1 }
  0xcc   :  { %v134_v25 = vpop.permute.xlu0 %133 }
  0xcd   :  { %vm135_vm2 = vcmp.eq.s32.totalorder %v134_v25, %v131_v24 }
  0xce   :  { %3458 = vmatmul.mubr.msk.f32.vlgmr.msra.gmra.mxu1 %vm135_vm2, %v3990_v27 }
  0xcf   :  { %3461 = vmatpush3.xpose.msk.msra.mxu1 %vm243_vm1, %v242_v26  ;;  %3468 = vmatprep.mubr.msk.f32.mxu1 %vm3989_vm0, %v3988_v1 }
  0xd0   :  { %3462 = vmatprep.subr.mxu1 %v3988_v1 }
  0xd3   :  { %3463 = vmatpush3.xpose.msk.msra.mxu1 %vm243_vm1, %v241_v28  ;;  %v3170_v28 = vld [vmem:[#allocation8] ss:$0 sm:$0xff] }
  0xd4   :  { %3464 = vmatprep.subr.mxu1 %v3988_v1 }
  0xd7   :  { %3465 = vmatpush3.xpose.msk.msra.mxu1 %vm243_vm1, %v240_v29 }
  0xd8   :  { %3466 = vmatprep.subr.mxu1 %v3988_v1 }
  0xdb   :  { %3467 = vmatpush3.xpose.msk.msra.mxu1 %vm243_vm1, %v239_v30 }
  0xdc   :  { %3471 = vmatprep.subr.mxu1 %v3988_v1 }
  0xde   :  { %3469 = vmatmul.mubr.msk.f32.vlgmr.msra.gmra.mxu1 %vm243_vm1, %v4219_v31 }
  0xdf   :  { %3472 = vmatpush3.xpose.msk.msra.mxu1 %vm243_vm1, %v3140_v32  ;;  %3479 = vmatprep.mubr.msk.f32.mxu1 %vm3989_vm0, %v3988_v1  ;;  %v3164_v32 = vld [vmem:[#allocation7] ss:$0 sm:$0xff] }
  0xe0   :  { %3473 = vmatprep.subr.mxu1 %v3988_v1 }
  0xe3   :  { %3474 = vmatpush3.xpose.msk.msra.mxu1 %vm243_vm1, %v3139_v33 }
  0xe4   :  { %3475 = vmatprep.subr.mxu1 %v3988_v1 }
  0xe7   :  { %3476 = vmatpush3.xpose.msk.msra.mxu1 %vm243_vm1, %v3138_v34 }
  0xe8   :  { %3477 = vmatprep.subr.mxu1 %v3988_v1 }
  0xeb   :  { %3478 = vmatpush3.xpose.msk.msra.mxu1 %vm243_vm1, %v3137_v35 }
  0xec   :  { %3493 = vmatprep.subr.mxu1 %v3988_v1 }
  0xee   :  { %3480 = vmatmul.mubr.msk.f32.vlgmr.msra.gmra.mxu1 %vm243_vm1, %v4219_v31 }
  0xef   :  { %3494 = vmatpush3.xpose.msk.msra.mxu1 %vm243_vm1, %v3127_v36  ;;  %3501 = vmatprep.mubr.msk.f32.mxu1 %vm3989_vm0, %v3988_v1 }
  0xf0   :  { %3495 = vmatprep.subr.mxu1 %v3988_v1 }
  0xf3   :  { %3496 = vmatpush3.xpose.msk.msra.mxu1 %vm243_vm1, %v3126_v37 }
  0xf4   :  { %3497 = vmatprep.subr.mxu1 %v3988_v1 }
  0xf7   :  { %3498 = vmatpush3.xpose.msk.msra.mxu1 %vm243_vm1, %v3125_v38 }
  0xf8   :  { %3499 = vmatprep.subr.mxu1 %v3988_v1 }
  0xfb   :  { %3500 = vmatpush3.xpose.msk.msra.mxu1 %vm243_vm1, %v3124_v39 }
  0xfc   :  { %3515 = vmatprep.subr.mxu1 %v3988_v1 }
 0x18e   :  { %v220_v41 = vpop.f32.mrf.mxu1 }
 0x18f   :  { %3491 = vmatmul.mubr.msk.f32.vlgmr.msra.gmra.mxu0 %vm243_vm1, %v220_v41  ;;  %3502 = vmatmul.mubr.msk.f32.vlgmr.msra.gmra.mxu1 %vm243_vm1, %v220_v41 }
 0x190   :  { %3505 = vmatpush3.xpose.msk.msra.mxu0 %vm243_vm1, %v3131_v40  ;;  %v3459_v43 = vpop.f32.mrf.mxu1  ;;  %3512 = vmatprep.mubr.msk.f32.mxu0 %vm3989_vm0, %v3988_v1 }
 0x191   :  { %3506 = vmatprep.subr.mxu0 %v3988_v1  ;;  %3516 = vmatpush3.xpose.msk.msra.mxu1 %vm243_vm1, %v3149_v42  ;;  %v3187_v43 = vld [vmem:[%s4764_s4 + $0xb8] sm:$0xff] }
 0x192   :  { %3517 = vmatprep.subr.mxu1 %v3988_v1  ;;  %3523 = vmatprep.mubr.msk.f32.mxu1 %vm3989_vm0, %v3988_v1 }
 0x194   :  { %3507 = vmatpush3.xpose.msk.msra.mxu0 %vm243_vm1, %v3130_v44  ;;  %v3209_v44 = vld [vmem:[%s4765_s5 + $0xb8] sm:$0xff] }
 0x195   :  { %3508 = vmatprep.subr.mxu0 %v3988_v1  ;;  %3518 = vmatpush3.xpose.msk.msra.mxu1 %vm243_vm1, %v3148_v45  ;;  %v3208_v45 = vld [vmem:[%s4765_s5 + $0xb0] sm:$0xff] }
 0x196   :  { %3519 = vmatprep.subr.mxu1 %v3988_v1 }
 0x198   :  { %3509 = vmatpush3.xpose.msk.msra.mxu0 %vm243_vm1, %v3129_v46  ;;  %v3185_v46 = vld [vmem:[%s4764_s4 + $0xa8] sm:$0xff] }
 0x199   :  { %3510 = vmatprep.subr.mxu0 %v3988_v1  ;;  %3520 = vmatpush3.xpose.msk.msra.mxu1 %vm243_vm1, %v3147_v47  ;;  %v3207_v47 = vld [vmem:[%s4765_s5 + $0xa8] sm:$0xff] }
 0x19a   :  { %3521 = vmatprep.subr.mxu1 %v3988_v1 }
 0x19c   :  { %3511 = vmatpush3.xpose.msk.msra.mxu0 %vm243_vm1, %v3128_v48  ;;  %v3184_v48 = vld [vmem:[%s4764_s4 + $0xa0] sm:$0xff] }
 0x19d   :  { %3522 = vmatpush3.xpose.msk.msra.mxu1 %vm243_vm1, %v3146_v49  ;;  %3526 = vmatprep.subr.mxu0 %v3988_v1  ;;  %v3206_v49 = vld [vmem:[%s4765_s5 + $0xa0] sm:$0xff] }
 0x19e   :  { %v4315_v50 = vpop.f32.mrf.mxu1  ;;  %3537 = vmatprep.subr.mxu1 %v3988_v1 }
 0x19f   :  { %3513 = vmatmul.mubr.msk.f32.vlgmr.msra.gmra.mxu0 %vm243_vm1, %v220_v41 }
 0x1a0   :  { %3524 = vmatmul.mubr.msk.f32.vlgmr.msra.gmra.mxu1 %vm243_vm1, %v4219_v31  ;;  %v3470_v51 = vpop.f32.mrf.mxu1  ;;  %3534 = vmatprep.mubr.msk.f32.mxu0 %vm3989_vm0, %v3988_v1 }
 0x1a1   :  { %3545 = vmatprep.mubr.msk.f32.mxu1 %vm3989_vm0, %v3988_v1  ;;  %3527 = vmatpush3.xpose.msk.msra.mxu0 %vm243_vm1, %v3191_v54  ;;  %v4477_v54 = vld [vmem:[%s4763_s3] sm:$0xff] }
 0x1a2   :  { %3538 = vmatpush3.xpose.msk.msra.mxu1 %vm243_vm1, %v3200_v55  ;;  %3528 = vmatprep.subr.mxu0 %v3988_v1  ;;  %v4482_v55 = vld [vmem:[%s4763_s3 + $0x8] sm:$0xff] }
 0x1a3   :  { %3539 = vmatprep.subr.mxu1 %v3988_v1 }
 0x1a5   :  { %3529 = vmatpush3.xpose.msk.msra.mxu0 %vm243_vm1, %v3190_v56 }
 0x1a6   :  { %3530 = vmatprep.subr.mxu0 %v3988_v1  ;;  %3540 = vmatpush3.xpose.msk.msra.mxu1 %vm243_vm1, %v3199_v57  ;;  %v3215_v57 = vld [vmem:[#allocation5 + $0x2] ss:$0 sm:$0xff] }
 0x1a7   :  { %3541 = vmatprep.subr.mxu1 %v3988_v1 }
 0x1a9   :  { %3531 = vmatpush3.xpose.msk.msra.mxu0 %vm243_vm1, %v3189_v58 }
 0x1aa   :  { %3542 = vmatpush3.xpose.msk.msra.mxu1 %vm243_vm1, %v3198_v59  ;;  %3532 = vmatprep.subr.mxu0 %v3988_v1 }
 0x1ab   :  { %3543 = vmatprep.subr.mxu1 %v3988_v1 }
 0x1ad   :  { %3533 = vmatpush3.xpose.msk.msra.mxu0 %vm243_vm1, %v3188_v60 }
 0x1ae   :  { %v4325_v52 = vpop.f32.mrf.mxu1  ;;  %3544 = vmatpush3.xpose.msk.msra.mxu1 %vm243_vm1, %v3197_v61  ;;  %3548 = vmatprep.subr.mxu0 %v3988_v1 }
 0x1af   :  { %3559 = vmatprep.subr.mxu1 %v3988_v1 }
 0x1b0   :  { %v3481_v53 = vpop.f32.mrf.mxu1  ;;  %3535 = vmatmul.mubr.msk.f32.vlgmr.msra.gmra.mxu0 %vm243_vm1, %v4365_v62 }
 0x1b1   :  { %3549 = vmatpush3.xpose.msk.msra.mxu0 %vm243_vm1, %v3179_v63  ;;  %3546 = vmatmul.mubr.msk.f32.vlgmr.msra.gmra.mxu1 %vm243_vm1, %v4365_v62 }
 0x1b2   :  { %3560 = vmatpush3.xpose.msk.msra.mxu1 %vm243_vm1, %v3183_v0  ;;  %3550 = vmatprep.subr.mxu0 %v3988_v1 }
 0x1b3   :  { %3561 = vmatprep.subr.mxu1 %v3988_v1  ;;  %3556 = vmatprep.mubr.msk.f32.mxu0 %vm3989_vm0, %v3988_v1 }
 0x1b4   :  { %3567 = vmatprep.mubr.msk.f32.mxu1 %vm3989_vm0, %v3988_v1 }
 0x1b5   :  { %3551 = vmatpush3.xpose.msk.msra.mxu0 %vm243_vm1, %v3178_v2 }
 0x1b6   :  { %3562 = vmatpush3.xpose.msk.msra.mxu1 %vm243_vm1, %v3182_v3  ;;  %3552 = vmatprep.subr.mxu0 %v3988_v1  ;;  %v3222_v3 = vld [vmem:[#allocation5 + $0x3] ss:$0 sm:$0xff] }
 0x1b7   :  { %3563 = vmatprep.subr.mxu1 %v3988_v1 }
 0x1b9   :  { %3553 = vmatpush3.xpose.msk.msra.mxu0 %vm243_vm1, %v3177_v4 }
 0x1ba   :  { %3564 = vmatpush3.xpose.msk.msra.mxu1 %vm243_vm1, %v3181_v5  ;;  %3554 = vmatprep.subr.mxu0 %v3988_v1 }
 0x1bb   :  { %3565 = vmatprep.subr.mxu1 %v3988_v1 }
 0x1bd   :  { %3555 = vmatpush3.xpose.msk.msra.mxu0 %vm243_vm1, %v3176_v6 }
 0x1be   :  { %3566 = vmatpush3.xpose.msk.msra.mxu1 %vm243_vm1, %v3180_v7  ;;  %3570 = vmatprep.subr.mxu0 %v3988_v1 }
 0x1bf   :  { %3581 = vmatprep.subr.mxu1 %v3988_v1 }
 0x24f   :  { %v502_v8 = vpop.f32.mrf.mxu0  ;;  %v598_v10 = vpop.f32.mrf.mxu1 }
 0x250   :  { %v503_v11 = vadd.f32 %v502_v8, %v4315_v50  ;;  %v599_v16 = vadd.f32 %v598_v10, %v4325_v52 }
 0x251   :  { %v3492_v12 = vpop.f32.mrf.mxu0  ;;  %v3503_v13 = vpop.f32.mrf.mxu1 }
 0x252   :  { %v513_v14 = vadd.f32 %v3155_v9, %v503_v11  ;;  %v610_v18 = vadd.f32 %v3162_v17, %v599_v16  ;;  %v3230_v13 = vld [vmem:[#allocation8 + $0x1] ss:$0 sm:$0xff]  ;;  %v3224_v16 = vld [vmem:[#allocation7 + $0x1] ss:$0 sm:$0xff] }
 0x254   :  { %v3156_v15 = vmul.f32 -1.442695, %v513_v14  ;;  %v3163_v19 = vmul.f32 -1.442695, %v610_v18 }
 0x256   :  { %3747 = vpow2.f32 %v3156_v15 }
 0x257   :  { %3749 = vpow2.f32 %v3163_v19 }
 0x25f   :  { %v702_v20 = vpop.f32.mrf.mxu0 }
 0x260   :  { %v791_v21 = vpop.f32.mrf.mxu1  ;;  %v703_v34 = vadd.f32 %v3164_v32, %v702_v20 }
 0x261   :  { %v3514_v22 = vpop.f32.mrf.mxu0  ;;  %v792_v30 = vadd.f32 %v3170_v28, %v791_v21  ;;  %v3991_v21 = vmov 1966171168  }
 0x262   :  { %v3525_v24 = vpop.f32.mrf.mxu1  ;;  %v1399_v22 = vunpack.c.l.s4 %v3991_v21 }
 0x263   :  { %v3748_v25 = vpop.eup %3747 }
 0x264   :  { %v517_v26 = vadd.f32 1.0, %v3748_v25  ;;  %v3750_v27 = vpop.eup %3749  ;;  %v1400_v25 = vunpack.c.0.s8 %v1399_v22 }
 0x265   :  { %v614_v29 = vadd.f32 1.0, %v3750_v27 }
 0x266   :  { %3751 = vrcp.f32 %v517_v26  ;;  %v1402_v26 = vshrl.u32 %v130_v23, 7  ;;  %v4502_v23 = vld [vmem:[%s4763_s3 + $0x10] sm:$0xff] }
 0x267   :  { %3753 = vrcp.f32 %v614_v29 }
 0x268   :  { %v1403_v29 = vsub.s32 %v1400_v25, %v1402_v26 }
 0x270   :  { %v906_v50 = vpop.f32.mrf.mxu0 }
 0x271   :  { %v993_v51 = vpop.f32.mrf.mxu1 }
 0x272   :  { %v3536_v52 = vpop.f32.mrf.mxu0 }
 0x273   :  { %v3752_v33 = vpop.eup %3751  ;;  %v3547_v53 = vpop.f32.mrf.mxu1 }
 0x274   :  { %v795_v35 = vmul.f32 %v3752_v33, %v792_v30  ;;  %v3754_v37 = vpop.eup %3753 }
 0x275   :  { %v798_v38 = vsub.f32 1.0, %v3754_v37  ;;  %v800_v41 = vmul.f32 %v3754_v37, %v4219_v31  ;;  %v3186_v31 = vld [vmem:[%s4764_s4 + $0xb0] sm:$0xff] }
 0x276   :  { %v796_v36 = vadd.f32 %v795_v35, %v703_v34 }
 0x278   :  { %3755 = vtanh.f32 %v796_v36 }
 0x285   :  { %v3756_v39 = vpop.eup %3755 }
 0x286   :  { %v799_v40 = vmul.f32 %v3756_v39, %v798_v38  ;;  %v4508_v38 = vld [vmem:[%s4763_s3 + $0x18] sm:$0xff] }
 0x288   :  { %v801_v42 = vadd.f32 %v800_v41, %v799_v40  ;;  %v4519_v41 = vld [vmem:[%s4763_s3 + $0x20] sm:$0xff] }
 0x28a   :  { %3557 = vmatmul.mubr.msk.f32.vlgmr.msra.gmra.mxu0 %vm243_vm1, %v801_v42  ;;  %802 = vst.msk [vmem:[#allocation14] sm:$0xff] %vm243_vm1, %v801_v42  ;;  %3568 = vmatmul.mubr.msk.f32.vlgmr.msra.gmra.mxu1 %vm243_vm1, %v801_v42 }
 0x28b   :  { %3571 = vmatpush3.xpose.msk.msra.mxu0 %vm243_vm1, %v3187_v43  ;;  %3578 = vmatprep.mubr.msk.f32.mxu0 %vm3989_vm0, %v3988_v1  ;;  %v4530_v43 = vld [vmem:[%s4763_s3 + $0x28] sm:$0xff] }
 0x28c   :  { %3572 = vmatprep.subr.mxu0 %v3988_v1  ;;  %3582 = vmatpush3.xpose.msk.msra.mxu1 %vm243_vm1, %v3209_v44 }
 0x28d   :  { %3583 = vmatprep.subr.mxu1 %v3988_v1  ;;  %3589 = vmatprep.mubr.msk.f32.mxu1 %vm3989_vm0, %v3988_v1 }
 0x28f   :  { %3573 = vmatpush3.xpose.msk.msra.mxu0 %vm243_vm1, %v3186_v31 }
 0x290   :  { %3574 = vmatprep.subr.mxu0 %v3988_v1  ;;  %3584 = vmatpush3.xpose.msk.msra.mxu1 %vm243_vm1, %v3208_v45  ;;  %v4541_v45 = vld [vmem:[%s4763_s3 + $0x30] sm:$0xff] }
 0x291   :  { %3585 = vmatprep.subr.mxu1 %v3988_v1 }
 0x293   :  { %3575 = vmatpush3.xpose.msk.msra.mxu0 %vm243_vm1, %v3185_v46 }
 0x294   :  { %3576 = vmatprep.subr.mxu0 %v3988_v1  ;;  %3586 = vmatpush3.xpose.msk.msra.mxu1 %vm243_vm1, %v3207_v47  ;;  %v4552_v47 = vld [vmem:[%s4763_s3 + $0x38] sm:$0xff] }
 0x295   :  { %3587 = vmatprep.subr.mxu1 %v3988_v1 }
 0x297   :  { %3577 = vmatpush3.xpose.msk.msra.mxu0 %vm243_vm1, %v3184_v48 }
 0x298   :  { %3588 = vmatpush3.xpose.msk.msra.mxu1 %vm243_vm1, %v3206_v49  ;;  %3592 = vmatprep.subr.mxu0 %v3988_v1 }
 0x299   :  { %3597 = vmatprep.subr.mxu1 %v3988_v1 }
 0x29a   :  { %3579 = vmatmul.mubr.msk.f32.vlgmr.msra.gmra.mxu0 %vm243_vm1, %v801_v42 }
 0x29b   :  { %3590 = vmatmul.mubr.msk.f32.vlgmr.msra.gmra.mxu1 %vm243_vm1, %v4365_v62  ;;  %3594 = vmatprep.mubr.msk.f32.mxu0 %vm3989_vm0, %v3988_v1 }
 0x29c   :  { %3599 = vmatprep.mubr.msk.f32.mxu1 %vm3989_vm0, %v3988_v1  ;;  %3593 = vmatpush3.xpose.msk.msra.mxu0 %vm243_vm1, %v4477_v54 }
 0x29d   :  { %3598 = vmatpush3.xpose.msk.msra.mxu1 %vm243_vm1, %v4482_v55  ;;  %3602 = vmatprep.subr.mxu0 %v3988_v1 }
 0x29e   :  { %3607 = vmatprep.subr.mxu1 %v3988_v1 }
 0x34a   :  { %v1083_v56 = vpop.f32.mrf.mxu0  ;;  %v1180_v58 = vpop.f32.mrf.mxu1 }
 0x34b   :  { %v1084_v59 = vadd.f32 %v1083_v56, %v906_v50  ;;  %v1181_v2 = vadd.f32 %v1180_v58, %v993_v51 }
 0x34c   :  { %v3558_v60 = vpop.f32.mrf.mxu0  ;;  %v3569_v61 = vpop.f32.mrf.mxu1 }
 0x34d   :  { %v1095_v63 = vadd.f32 %v3215_v57, %v1084_v59  ;;  %v1192_v4 = vadd.f32 %v3222_v3, %v1181_v2 }
 0x34f   :  { %v3216_v0 = vmul.f32 -1.442695, %v1095_v63  ;;  %v3223_v5 = vmul.f32 -1.442695, %v1192_v4 }
 0x351   :  { %3757 = vpow2.f32 %v3216_v0 }
 0x352   :  { %3759 = vpow2.f32 %v3223_v5 }
 0x35a   :  { %v1285_v6 = vpop.f32.mrf.mxu0 }
 0x35b   :  { %v1375_v7 = vpop.f32.mrf.mxu1  ;;  %v1286_v18 = vadd.f32 %v3224_v16, %v1285_v6 }
 0x35c   :  { %v3580_v8 = vpop.f32.mrf.mxu0  ;;  %v1376_v15 = vadd.f32 %v3230_v13, %v1375_v7 }
 0x35d   :  { %v3591_v9 = vpop.f32.mrf.mxu1 }
 0x35e   :  { %v3758_v10 = vpop.eup %3757 }
 0x35f   :  { %v1099_v11 = vadd.f32 1.0, %v3758_v10  ;;  %v3760_v12 = vpop.eup %3759 }
 0x360   :  { %v1196_v14 = vadd.f32 1.0, %v3760_v12 }
 0x361   :  { %3761 = vrcp.f32 %v1099_v11 }
 0x362   :  { %3763 = vrcp.f32 %v1196_v14 }
 0x36e   :  { %v3762_v17 = vpop.eup %3761 }
 0x36f   :  { %v1379_v19 = vmul.f32 %v3762_v17, %v1376_v15  ;;  %v3764_v24 = vpop.eup %3763 }
 0x370   :  { %v1382_v27 = vsub.f32 1.0, %v3764_v24  ;;  %v1384_v30 = vmul.f32 %v3764_v24, %v4365_v62 }
 0x371   :  { %v1380_v20 = vadd.f32 %v1379_v19, %v1286_v18 }
 0x373   :  { %3765 = vtanh.f32 %v1380_v20 }
 0x380   :  { %v3766_v28 = vpop.eup %3765 }
 0x381   :  { %v1383_v32 = vmul.f32 %v3766_v28, %v1382_v27 }
 0x383   :  { %v4492_v33 = vadd.f32 %v1384_v30, %v1383_v32 }
 0x385   :  { %1387 = vst.msk [vmem:[#allocation14 + $0x8] sm:$0xff] %vm243_vm1, %v4492_v33  ;;  %v1404_v34 = vrot.slane %v4492_v33, %v1403_v29  ;;  %v1397_v35 = vcombine.high %v4492_v33, %v4492_v33 }
 0x387   :  { %v1420_v36 = vrot.slane %v1404_v34, %v1403_v29  ;;  %v1412_v37 = vcombine.high %v1404_v34, %v1404_v34  ;;  %v1411_v39 = vrot.slane %v1397_v35, %v1403_v29 }
 0x389   :  { %3595 = vmatmul.mubr.msk.f32.vlgmr.msra.gmra.mxu0 %vm243_vm1, %v1420_v36  ;;  %v1434_v62 = vrot.slane %v1412_v37, %v1403_v29  ;;  %v1442_v40 = vcombine.high %v1420_v36, %v1420_v36  ;;  %v1413_v44 = vcombine.high %v1411_v39, %v1411_v39  ;;  %v1427_v31 = vrot.slane %v1411_v39, %v1403_v29 }
 0x38a   :  { %3603 = vmatpush3.xpose.msk.msra.mxu0 %vm243_vm1, %v4502_v23  ;;  %3604 = vmatprep.mubr.msk.f32.mxu0 %vm3989_vm0, %v3988_v1 }
 0x38b   :  { %3600 = vmatmul.mubr.msk.f32.vlgmr.msra.gmra.mxu1 %vm243_vm1, %v1434_v62  ;;  %3612 = vmatprep.subr.mxu0 %v3988_v1  ;;  %v1444_v42 = vcombine.high %v1434_v62, %v1434_v62  ;;  %v1441_v46 = vrot.slane %v1413_v44, %v1403_v29  ;;  %v1443_v48 = vcombine.high %v1427_v31, %v1427_v31 }
 0x38c   :  { %3608 = vmatpush3.xpose.msk.msra.mxu1 %vm243_vm1, %v4508_v38  ;;  %3609 = vmatprep.mubr.msk.f32.mxu1 %vm3989_vm0, %v3988_v1 }
 0x38d   :  { %3605 = vmatmul.mubr.msk.f32.vlgmr.msra.gmra.mxu0 %vm243_vm1, %v1442_v40  ;;  %3617 = vmatprep.subr.mxu1 %v3988_v1  ;;  %v1445_v49 = vcombine.high %v1441_v46, %v1441_v46 }
 0x38e   :  { %3613 = vmatpush3.xpose.msk.msra.mxu0 %vm243_vm1, %v4519_v41  ;;  %3614 = vmatprep.mubr.msk.f32.mxu0 %vm3989_vm0, %v3988_v1 }
 0x38f   :  { %3610 = vmatmul.mubr.msk.f32.vlgmr.msra.gmra.mxu1 %vm243_vm1, %v1444_v42  ;;  %3622 = vmatprep.subr.mxu0 %v3988_v1 }
 0x390   :  { %3618 = vmatpush3.xpose.msk.msra.mxu1 %vm243_vm1, %v4530_v43  ;;  %3619 = vmatprep.mubr.msk.f32.mxu1 %vm3989_vm0, %v3988_v1 }
 0x391   :  { %3615 = vmatmul.mubr.msk.f32.vlgmr.msra.gmra.mxu0 %vm243_vm1, %v1427_v31  ;;  %3627 = vmatprep.subr.mxu1 %v3988_v1 }
 0x392   :  { %3623 = vmatpush3.xpose.msk.msra.mxu0 %vm243_vm1, %v4541_v45  ;;  %3624 = vmatprep.mubr.msk.f32.mxu0 %vm3989_vm0, %v3988_v1 }
 0x393   :  { %3620 = vmatmul.mubr.msk.f32.vlgmr.msra.gmra.mxu1 %vm243_vm1, %v1441_v46  ;;  %3632 = vmatprep.subr.mxu0 %v3988_v1 }
 0x394   :  { %3628 = vmatpush3.xpose.msk.msra.mxu1 %vm243_vm1, %v4552_v47  ;;  %3629 = vmatprep.mubr.msk.f32.mxu1 %vm3989_vm0, %v3988_v1 }
 0x395   :  { %3625 = vmatmul.mubr.msk.f32.vlgmr.msra.gmra.mxu0 %vm243_vm1, %v1443_v48  ;;  %3637 = vmatprep.subr.mxu1 %v3988_v1 }
 0x396   :  { %3633 = vmatpush3.msra.mxu0 %v4477_v54  ;;  %3634 = vmatprep.mubr.msk.f32.mxu0 %vm3989_vm0, %v3988_v1 }
 0x397   :  { %3630 = vmatmul.mubr.msk.f32.vlgmr.msra.gmra.mxu1 %vm243_vm1, %v1445_v49  ;;  %3642 = vmatprep.subr.mxu0 %v3988_v1 }
 0x398   :  { %3638 = vmatpush3.msra.mxu1 %v4482_v55  ;;  %3639 = vmatprep.mubr.msk.f32.mxu1 %vm3989_vm0, %v3988_v1 }
 0x399   :  { %3647 = vmatprep.subr.mxu1 %v3988_v1 }
 0x449   :  { %v1517_v50 = vpop.f32.mrf.mxu0 }
 0x44a   :  { %v2047_v51 = vsel %vm2046_vm3, %v1517_v50, -inf }
 0x44b   :  { %2048 = vmax.xlane.f32.xlu0 %v2047_v51  ;;  %v3596_v52 = vpop.f32.mrf.mxu0  ;;  %v1592_v53 = vpop.f32.mrf.mxu1 }
 0x44c   :  { %v2050_v54 = vsel %vm2046_vm3, %v1592_v53, -inf }
 0x44d   :  { %v1667_v56 = vpop.f32.mrf.mxu0  ;;  %2051 = vmax.xlane.f32.xlu1 %v2050_v54  ;;  %v3601_v57 = vpop.f32.mrf.mxu1 }
 0x44e   :  { %v2053_v55 = vsel %vm2046_vm3, %v1667_v56, -inf }
 0x44f   :  { %v3606_v58 = vpop.f32.mrf.mxu0  ;;  %v1742_v59 = vpop.f32.mrf.mxu1 }
 0x450   :  { %v2056_v2 = vsel %vm2046_vm3, %v1742_v59, -inf }
 0x451   :  { %v1817_v60 = vpop.f32.mrf.mxu0  ;;  %2054 = vmax.xlane.f32.xlu1 %v2053_v55  ;;  %v3611_v61 = vpop.f32.mrf.mxu1 }
 0x452   :  { %v2059_v7 = vsel %vm2046_vm3, %v1817_v60, -inf }
 0x453   :  { %v3616_v63 = vpop.f32.mrf.mxu0  ;;  %v1892_v0 = vpop.f32.mrf.mxu1 }
 0x454   :  { %v2062_v9 = vsel %vm2046_vm3, %v1892_v0, -inf }
 0x455   :  { %v1967_v3 = vpop.f32.mrf.mxu0  ;;  %2057 = vmax.xlane.f32.xlu1 %v2056_v2  ;;  %v3621_v4 = vpop.f32.mrf.mxu1 }
 0x456   :  { %v2065_v10 = vsel %vm2046_vm3, %v1967_v3, -inf }
 0x457   :  { %v3626_v5 = vpop.f32.mrf.mxu0  ;;  %v2042_v6 = vpop.f32.mrf.mxu1 }
 0x458   :  { %v2068_v11 = vsel %vm2046_vm3, %v2042_v6, -inf }
 0x459   :  { %2060 = vmax.xlane.f32.xlu1 %v2059_v7  ;;  %v3631_v8 = vpop.f32.mrf.mxu1 }
 0x45d   :  { %2063 = vmax.xlane.f32.xlu1 %v2062_v9 }
 0x461   :  { %2066 = vmax.xlane.f32.xlu1 %v2065_v10 }
 0x465   :  { %2069 = vmax.xlane.f32.xlu1 %v2068_v11 }
 0x4d4   :  { %v2049_v12 = vpop.xlane.xlu0 %2048 }
 0x4d5   :  { %v2071_v13 = vsub.f32 %v1517_v50, %v2049_v12 }
 0x4d6   :  { %v2052_v14 = vpop.xlane.xlu1 %2051 }
 0x4d7   :  { %v2079_v15 = vmul.f32 1.442695, %v2071_v13  ;;  %v2072_v16 = vsub.f32 %v1592_v53, %v2052_v14 }
 0x4d9   :  { %3767 = vpow2.f32 %v2079_v15  ;;  %v2081_v17 = vmul.f32 1.442695, %v2072_v16  ;;  %v2723_v15 = vld [vmem:[%s4769_s9 + $0x18] sm:$0xff]  ;;  %v2721_v16 = vld [vmem:[%s4769_s9 + $0x8] sm:$0xff] }
 0x4da   :  { %v2055_v18 = vpop.xlane.xlu1 %2054 }
 0x4db   :  { %3769 = vpow2.f32 %v2081_v17  ;;  %v2073_v19 = vsub.f32 %v1667_v56, %v2055_v18  ;;  %v2720_v17 = vld [vmem:[%s4769_s9] sm:$0xff]  ;;  %v2727_v18 = vld [vmem:[%s4770_s10 + $0x18] sm:$0xff] }
 0x4dd   :  { %v2083_v20 = vmul.f32 1.442695, %v2073_v19  ;;  %v2726_v19 = vld [vmem:[%s4770_s10 + $0x10] sm:$0xff] }
 0x4de   :  { %v2058_v21 = vpop.xlane.xlu1 %2057 }
 0x4df   :  { %3771 = vpow2.f32 %v2083_v20  ;;  %v2074_v22 = vsub.f32 %v1742_v59, %v2058_v21  ;;  %v2724_v20 = vld [vmem:[%s4770_s10] sm:$0xff] }
 0x4e1   :  { %v2085_v24 = vmul.f32 1.442695, %v2074_v22 }
 0x4e2   :  { %v2061_v25 = vpop.xlane.xlu1 %2060 }
 0x4e3   :  { %3773 = vpow2.f32 %v2085_v24  ;;  %v2075_v26 = vsub.f32 %v1817_v60, %v2061_v25 }
 0x4e5   :  { %v2087_v27 = vmul.f32 1.442695, %v2075_v26 }
 0x4e6   :  { %v3768_v28 = vpop.eup %3767  ;;  %v2064_v29 = vpop.xlane.xlu1 %2063 }
 0x4e7   :  { %3775 = vpow2.f32 %v2087_v27  ;;  %v2076_v30 = vsub.f32 %v1892_v0, %v2064_v29  ;;  %v2095_v32 = vsel %vm2046_vm3, %v3768_v28, 0.0 }
 0x4e8   :  { %v3770_v34 = vpop.eup %3769  ;;  %2096 = vadd.xlane.f32.xlu1 %v2095_v32 }
 0x4e9   :  { %v2089_v35 = vmul.f32 1.442695, %v2076_v30  ;;  %v2098_v62 = vsel %vm2046_vm3, %v3770_v34, 0.0 }
 0x4ea   :  { %v2067_v36 = vpop.xlane.xlu1 %2066 }
 0x4eb   :  { %3777 = vpow2.f32 %v2089_v35  ;;  %v2077_v37 = vsub.f32 %v1967_v3, %v2067_v36 }
 0x4ec   :  { %v3772_v39 = vpop.eup %3771  ;;  %2099 = vadd.xlane.f32.xlu1 %v2098_v62 }
 0x4ed   :  { %v2091_v40 = vmul.f32 1.442695, %v2077_v37  ;;  %v2101_v42 = vsel %vm2046_vm3, %v3772_v39, 0.0 }
 0x4ee   :  { %2102 = vadd.xlane.f32.xlu0 %v2101_v42  ;;  %v2070_v44 = vpop.xlane.xlu1 %2069 }
 0x4ef   :  { %3779 = vpow2.f32 %v2091_v40  ;;  %v2078_v31 = vsub.f32 %v2042_v6, %v2070_v44 }
 0x4f0   :  { %v3774_v46 = vpop.eup %3773 }
 0x4f1   :  { %v2093_v48 = vmul.f32 1.442695, %v2078_v31  ;;  %v2104_v49 = vsel %vm2046_vm3, %v3774_v46, 0.0 }
 0x4f2   :  { %2105 = vadd.xlane.f32.xlu1 %v2104_v49 }
 0x4f3   :  { %3781 = vpow2.f32 %v2093_v48 }
 0x4f4   :  { %v3776_v50 = vpop.eup %3775 }
 0x4f5   :  { %v2107_v51 = vsel %vm2046_vm3, %v3776_v50, 0.0 }
 0x4f6   :  { %2108 = vadd.xlane.f32.xlu0 %v2107_v51 }
 0x4f8   :  { %v3778_v52 = vpop.eup %3777 }
 0x4f9   :  { %v2110_v53 = vsel %vm2046_vm3, %v3778_v52, 0.0 }
 0x4fa   :  { %2111 = vadd.xlane.f32.xlu1 %v2110_v53 }
 0x4fc   :  { %v3780_v54 = vpop.eup %3779 }
 0x4fd   :  { %v2113_v56 = vsel %vm2046_vm3, %v3780_v54, 0.0 }
 0x4fe   :  { %2114 = vadd.xlane.f32.xlu0 %v2113_v56 }
 0x500   :  { %v3782_v57 = vpop.eup %3781 }
 0x501   :  { %v2116_v58 = vsel %vm2046_vm3, %v3782_v57, 0.0 }
 0x502   :  { %2117 = vadd.xlane.f32.xlu1 %v2116_v58 }
 0x571   :  { %v2097_v59 = vpop.xlane.xlu1 %2096 }
 0x572   :  { %3783 = vrcp.f32 %v2097_v59  ;;  %v2948_v59 = vld [vmem:[%s4772_s12 + $0x70] sm:$0xff] }
 0x575   :  { %v2100_v55 = vpop.xlane.xlu1 %2099 }
 0x576   :  { %3785 = vrcp.f32 %v2100_v55  ;;  %v2947_v55 = vld [vmem:[%s4772_s12 + $0x68] sm:$0xff] }
 0x577   :  { %v2103_v60 = vpop.xlane.xlu0 %2102 }
 0x578   :  { %3787 = vrcp.f32 %v2103_v60  ;;  %v2946_v60 = vld [vmem:[%s4772_s12 + $0x60] sm:$0xff] }
 0x57b   :  { %v2106_v61 = vpop.xlane.xlu1 %2105 }
 0x57c   :  { %3789 = vrcp.f32 %v2106_v61 }
 0x57f   :  { %v3784_v63 = vpop.eup %3783  ;;  %v2109_v0 = vpop.xlane.xlu0 %2108 }
 0x580   :  { %3791 = vrcp.f32 %v2109_v0  ;;  %v2127_v2 = vmul.f32 %v3784_v63, %v3768_v28  ;;  %v2945_v0 = vld [vmem:[%s4772_s12 + $0x58] sm:$0xff] }
 0x582   :  { %3635 = vmatmul.mubr.msk.f32.vlgmr.msra.gmra.mxu0 %vm2135_vm4, %v2127_v2  ;;  %v2944_v2 = vld [vmem:[%s4772_s12 + $0x50] sm:$0xff] }
 0x583   :  { %v3786_v3 = vpop.eup %3785  ;;  %v2112_v4 = vpop.xlane.xlu1 %2111  ;;  %3643 = vmatpush3.msra.mxu0 %v4502_v23  ;;  %3644 = vmatprep.mubr.msk.f32.mxu0 %vm3989_vm0, %v3988_v1 }
 0x584   :  { %3793 = vrcp.f32 %v2112_v4  ;;  %v2128_v5 = vmul.f32 %v3786_v3, %v3770_v34  ;;  %3652 = vmatprep.subr.mxu0 %v3988_v1  ;;  %v2943_v3 = vld [vmem:[%s4772_s12 + $0x48] sm:$0xff]  ;;  %v2942_v4 = vld [vmem:[%s4772_s12 + $0x40] sm:$0xff] }
 0x585   :  { %v3788_v6 = vpop.eup %3787 }
 0x586   :  { %3640 = vmatmul.mubr.msk.f32.vlgmr.msra.gmra.mxu1 %vm2135_vm4, %v2128_v5  ;;  %v2129_v7 = vmul.f32 %v3788_v6, %v3772_v39  ;;  %v2941_v5 = vld [vmem:[%s4772_s12 + $0x38] sm:$0xff]  ;;  %v2940_v6 = vld [vmem:[%s4772_s12 + $0x30] sm:$0xff] }
 0x587   :  { %v2115_v8 = vpop.xlane.xlu0 %2114  ;;  %3648 = vmatpush3.msra.mxu1 %v4508_v38  ;;  %3649 = vmatprep.mubr.msk.f32.mxu1 %vm3989_vm0, %v3988_v1 }
 0x588   :  { %3795 = vrcp.f32 %v2115_v8  ;;  %3645 = vmatmul.mubr.msk.f32.vlgmr.msra.gmra.mxu0 %vm2135_vm4, %v2129_v7  ;;  %3657 = vmatprep.subr.mxu1 %v3988_v1  ;;  %v2939_v7 = vld [vmem:[%s4772_s12 + $0x28] sm:$0xff]  ;;  %v2938_v8 = vld [vmem:[%s4772_s12 + $0x20] sm:$0xff] }
 0x589   :  { %v3790_v23 = vpop.eup %3789  ;;  %3653 = vmatpush3.msra.mxu0 %v4519_v41  ;;  %3654 = vmatprep.mubr.msk.f32.mxu0 %vm3989_vm0, %v3988_v1 }
 0x58a   :  { %v2130_v9 = vmul.f32 %v3790_v23, %v3774_v46  ;;  %3662 = vmatprep.subr.mxu0 %v3988_v1  ;;  %v2937_v23 = vld [vmem:[%s4772_s12 + $0x18] sm:$0xff] }
 0x58b   :  { %v2118_v10 = vpop.xlane.xlu1 %2117 }
 0x58c   :  { %3797 = vrcp.f32 %v2118_v10  ;;  %3650 = vmatmul.mubr.msk.f32.vlgmr.msra.gmra.mxu1 %vm2135_vm4, %v2130_v9  ;;  %v2936_v9 = vld [vmem:[%s4772_s12 + $0x10] sm:$0xff]  ;;  %v2935_v10 = vld [vmem:[%s4772_s12 + $0x8] sm:$0xff] }
 0x58d   :  { %v3792_v38 = vpop.eup %3791  ;;  %3658 = vmatpush3.msra.mxu1 %v4530_v43  ;;  %3659 = vmatprep.mubr.msk.f32.mxu1 %vm3989_vm0, %v3988_v1 }
 0x58e   :  { %v2131_v11 = vmul.f32 %v3792_v38, %v3776_v50  ;;  %3667 = vmatprep.subr.mxu1 %v3988_v1  ;;  %v2934_v38 = vld [vmem:[%s4772_s12] sm:$0xff] }
 0x590   :  { %3655 = vmatmul.mubr.msk.f32.vlgmr.msra.gmra.mxu0 %vm2135_vm4, %v2131_v11 }
 0x591   :  { %v3794_v41 = vpop.eup %3793  ;;  %3663 = vmatpush3.msra.mxu0 %v4541_v45  ;;  %3664 = vmatprep.mubr.msk.f32.mxu0 %vm3989_vm0, %v3988_v1 }
 0x592   :  { %v2132_v12 = vmul.f32 %v3794_v41, %v3778_v52  ;;  %3672 = vmatprep.subr.mxu0 %v3988_v1  ;;  %v3270_v41 = vld [vmem:[#allocation10] ss:$0 sm:$0xff] }
 0x594   :  { %3660 = vmatmul.mubr.msk.f32.vlgmr.msra.gmra.mxu1 %vm2135_vm4, %v2132_v12 }
 0x595   :  { %v3796_v43 = vpop.eup %3795  ;;  %3668 = vmatpush3.msra.mxu1 %v4552_v47  ;;  %3669 = vmatprep.mubr.msk.f32.mxu1 %vm3989_vm0, %v3988_v1  ;;  %v2722_v47 = vld [vmem:[%s4769_s9 + $0x10] sm:$0xff] }
 0x596   :  { %v2133_v13 = vmul.f32 %v3796_v43, %v3780_v54  ;;  %3683 = vmatprep.subr.mxu1 %v3988_v1 }
 0x598   :  { %3665 = vmatmul.mubr.msk.f32.vlgmr.msra.gmra.mxu0 %vm2135_vm4, %v2133_v13 }
 0x599   :  { %v3798_v45 = vpop.eup %3797  ;;  %3680 = vmatprep.mubr.msk.f32.mxu0 %vm3989_vm0, %v3988_v1  ;;  %3673 = vmatpush3.xpose.msk.msra.mxu0 %vm243_vm1, %v2727_v18 }
 0x59a   :  { %v2134_v14 = vmul.f32 %v3798_v45, %v3782_v57  ;;  %3674 = vmatprep.subr.mxu0 %v3988_v1  ;;  %v2949_v57 = vld [vmem:[%s4772_s12 + $0x78] sm:$0xff]  ;;  %s3992_s12 = smov [#allocation14]  }
 0x59b   :  { %s3103_s19 = sshll.u32 %s3992_s12, 4  ;;  %s3104_s19 = int_to_ptr.vmem [resolvable:$true] %s3103_s19 }
 0x59c   :  { %3670 = vmatmul.mubr.msk.f32.vlgmr.msra.gmra.mxu1 %vm2135_vm4, %v2134_v14  ;;  %v3271_v14 = vld [vmem:[#allocation11] ss:$0 sm:$0xff]  ;;  %s3925_s20 = scalar_lea.vmem %s3104_s19, 256  ;;  %p3930_p3 = scmp.lt.s32.totalorder %s3104_s19, %s3104_s19 }
 0x59d   :  { %3684 = vmatpush3.xpose.msk.msra.mxu1 %vm243_vm1, %v2723_v15  ;;  %3691 = vmatprep.mubr.msk.f32.mxu1 %vm3989_vm0, %v3988_v1  ;;  %p3926_p2 = scmp.ne.s32.totalorder %s3104_s19, %s3925_s20  ;;  %p3931_p4 = scmp.lt.s32.totalorder %s3925_s20, %s3925_s20 }
 0x59e   :  { %3685 = vmatprep.subr.mxu1 %v3988_v1  ;;  %3675 = vmatpush3.xpose.msk.msra.mxu0 %vm243_vm1, %v2726_v19 }
 0x59f   :  { %3676 = vmatprep.subr.mxu0 %v3988_v1  ;;  %p3932_p5 = por %p3931_p4, %p3930_p3 }
 0x5a1   :  { %3686 = vmatpush3.xpose.msk.msra.mxu1 %vm243_vm1, %v2722_v47  ;;  %p3933_p6 = pnand %p3932_p5, %p3926_p2 }
 0x5a2   :  { %3687 = vmatprep.subr.mxu1 %v3988_v1 }
 0x5a5   :  { %3688 = vmatpush3.xpose.msk.msra.mxu1 %vm243_vm1, %v2721_v16 }
 0x5a6   :  { %3689 = vmatprep.subr.mxu1 %v3988_v1 }
 0x5a9   :  { %3690 = vmatpush3.xpose.msk.msra.mxu1 %vm243_vm1, %v2720_v17 }
 0x5ac   :  { %3692 = vmatmul.mubr.msk.f32.vlgmr.msra.gmra.mxu1 %vm243_vm1, %v4492_v33  ;;  %v2725_v33 = vld [vmem:[%s4770_s10 + $0x8] sm:$0xff] }
 0x5ad   :  { %3677 = vmatpush3.xpose.msk.msra.mxu0 %vm243_vm1, %v2725_v33 }
 0x5ae   :  { %3678 = vmatprep.subr.mxu0 %v3988_v1 }
 0x5b1   :  { %3679 = vmatpush3.xpose.msk.msra.mxu0 %vm243_vm1, %v2724_v20 }
 0x5b2   :  { %3694 = vmatprep.subr.mxu0 %v3988_v1 }
 0x642   :  { %v2205_v21 = vpop.f32.mrf.mxu0 }
 0x644   :  { %v3636_v22 = vpop.f32.mrf.mxu0 }
 0x646   :  { %v2278_v24 = vpop.f32.mrf.mxu1 }
 0x647   :  { %v2736_v34 = vrot.slane %v2278_v24, 7 }
 0x648   :  { %v3641_v25 = vpop.f32.mrf.mxu1  ;;  %v2351_v26 = vpop.f32.mrf.mxu0 }
 0x649   :  { %v2739_v36 = vrot.slane %v2351_v26, 6  ;;  %v2738_v62 = vsel %vm2737_vm5, %v2736_v34, %v2205_v21 }
 0x64a   :  { %v3646_v27 = vpop.f32.mrf.mxu0 }
 0x64b   :  { %v2741_v31 = vsel %vm2740_vm6, %v2739_v36, %v2738_v62 }
 0x64c   :  { %v2424_v28 = vpop.f32.mrf.mxu1 }
 0x64d   :  { %v2742_v39 = vrot.slane %v2424_v28, 5 }
 0x64e   :  { %v3651_v29 = vpop.f32.mrf.mxu1 }
 0x64f   :  { %v2744_v49 = vsel %vm2743_vm7, %v2742_v39, %v2741_v31 }
 0x650   :  { %v2497_v30 = vpop.f32.mrf.mxu0 }
 0x651   :  { %v2745_v40 = vrot.slane %v2497_v30, 4 }
 0x652   :  { %v3656_v32 = vpop.f32.mrf.mxu0 }
 0x653   :  { %v2747_v50 = vsel %vm2746_vm8, %v2745_v40, %v2744_v49 }
 0x654   :  { %v2570_v35 = vpop.f32.mrf.mxu1 }
 0x655   :  { %v2748_v44 = vrot.slane %v2570_v35, 3 }
 0x656   :  { %v3661_v37 = vpop.f32.mrf.mxu1 }
 0x657   :  { %v2750_v52 = vsel %vm2749_vm9, %v2748_v44, %v2747_v50 }
 0x658   :  { %v2643_v42 = vpop.f32.mrf.mxu0 }
 0x659   :  { %v2751_v46 = vrot.slane %v2643_v42, 2 }
 0x65a   :  { %v3666_v48 = vpop.f32.mrf.mxu0 }
 0x65b   :  { %v2753_v54 = vsel %vm2752_vm10, %v2751_v46, %v2750_v52 }
 0x65c   :  { %v2716_v51 = vpop.f32.mrf.mxu1 }
 0x65d   :  { %v2754_v53 = vrot.slane %v2716_v51, 1 }
 0x65e   :  { %v3671_v56 = vpop.f32.mrf.mxu1 }
 0x65f   :  { %v2756_v58 = vsel %vm2755_vm11, %v2754_v53, %v2753_v54 }
 0x660   :  { %3681 = vmatmul.mubr.msk.f32.vlgmr.msra.gmra.mxu0 %vm243_vm1, %v2756_v58 }
 0x661   :  { %3695 = vmatpush3.xpose.msk.msra.mxu0 %vm243_vm1, %v2949_v57  ;;  %3726 = vmatprep.mubr.msk.f32.mxu0 %vm3989_vm0, %v3988_v1 }
 0x662   :  { %3696 = vmatprep.subr.mxu0 %v3988_v1 }
 0x665   :  { %3697 = vmatpush3.xpose.msk.msra.mxu0 %vm243_vm1, %v2948_v59 }
 0x666   :  { %3698 = vmatprep.subr.mxu0 %v3988_v1 }
 0x669   :  { %3699 = vmatpush3.xpose.msk.msra.mxu0 %vm243_vm1, %v2947_v55 }
 0x66a   :  { %3700 = vmatprep.subr.mxu0 %v3988_v1 }
 0x66c   :  { %v2921_v61 = vpop.f32.mrf.mxu1 }
 0x66d   :  { %3701 = vmatpush3.xpose.msk.msra.mxu0 %vm243_vm1, %v2946_v60 }
 0x66e   :  { %v3693_v63 = vpop.f32.mrf.mxu1  ;;  %3702 = vmatprep.subr.mxu0 %v3988_v1 }
 0x671   :  { %3703 = vmatpush3.xpose.msk.msra.mxu0 %vm243_vm1, %v2945_v0 }
 0x672   :  { %3704 = vmatprep.subr.mxu0 %v3988_v1 }
 0x675   :  { %3705 = vmatpush3.xpose.msk.msra.mxu0 %vm243_vm1, %v2944_v2 }
 0x676   :  { %3706 = vmatprep.subr.mxu0 %v3988_v1 }
 0x679   :  { %3707 = vmatpush3.xpose.msk.msra.mxu0 %vm243_vm1, %v2943_v3 }
 0x67a   :  { %3708 = vmatprep.subr.mxu0 %v3988_v1 }
 0x67d   :  { %3709 = vmatpush3.xpose.msk.msra.mxu0 %vm243_vm1, %v2942_v4 }
 0x67e   :  { %3710 = vmatprep.subr.mxu0 %v3988_v1 }
 0x681   :  { %3711 = vmatpush3.xpose.msk.msra.mxu0 %vm243_vm1, %v2941_v5 }
 0x682   :  { %3712 = vmatprep.subr.mxu0 %v3988_v1 }
 0x685   :  { %3713 = vmatpush3.xpose.msk.msra.mxu0 %vm243_vm1, %v2940_v6 }
 0x686   :  { %3714 = vmatprep.subr.mxu0 %v3988_v1 }
 0x689   :  { %3715 = vmatpush3.xpose.msk.msra.mxu0 %vm243_vm1, %v2939_v7 }
 0x68a   :  { %3716 = vmatprep.subr.mxu0 %v3988_v1 }
 0x68d   :  { %3717 = vmatpush3.xpose.msk.msra.mxu0 %vm243_vm1, %v2938_v8 }
 0x68e   :  { %3718 = vmatprep.subr.mxu0 %v3988_v1 }
 0x691   :  { %3719 = vmatpush3.xpose.msk.msra.mxu0 %vm243_vm1, %v2937_v23 }
 0x692   :  { %3720 = vmatprep.subr.mxu0 %v3988_v1 }
 0x695   :  { %3721 = vmatpush3.xpose.msk.msra.mxu0 %vm243_vm1, %v2936_v9 }
 0x696   :  { %3722 = vmatprep.subr.mxu0 %v3988_v1 }
 0x699   :  { %3723 = vmatpush3.xpose.msk.msra.mxu0 %vm243_vm1, %v2935_v10 }
 0x69a   :  { %3724 = vmatprep.subr.mxu0 %v3988_v1 }
 0x69d   :  { %3725 = vmatpush3.xpose.msk.msra.mxu0 %vm243_vm1, %v2934_v38 }
 0x720   :  { %v2837_v11 = vpop.f32.mrf.mxu0 }
 0x721   :  { %v2922_v12 = vadd.f32 %v2921_v61, %v2837_v11 }
 0x722   :  { %v3682_v43 = vpop.f32.mrf.mxu0 }
 0x723   :  { %v2932_v13 = vadd.f32 %v3270_v41, %v2922_v12 }
 0x725   :  { %3799 = vtanh.f32 %v2932_v13 }
 0x732   :  { %v3800_v45 = vpop.eup %3799 }
 0x733   :  { %3727 = vmatmul.mubr.msk.f32.vlgmr.msra.gmra.mxu0 %vm243_vm1, %v3800_v45 }
 0x7f3   :  { %v3074_v15 = vpop.f32.mrf.mxu0 }
 0x7f4   :  { %v3075_v47 = vadd.f32 %v3271_v14, %v3074_v15 }
 0x7f5   :  { %v3728_v16 = vpop.f32.mrf.mxu0 }
 0x7f6   :  { %3078 = vmax.xlane.f32.xlu0 %v3075_v47 }
 0x87f   :  { %v3079_v1 = vpop.xlane.xlu0 %3078 }
 0x880   :  { %v3080_v17 = vsub.f32 %v3075_v47, %v3079_v1 }
 0x882   :  { %v3081_v18 = vmul.f32 1.442695, %v3080_v17 }
 0x884   :  { %3801 = vpow2.f32 %v3081_v18 }
 0x891   :  { %v3802_v19 = vpop.eup %3801 }
 0x892   :  { %3083 = vadd.xlane.f32.xlu1 %v3802_v19 }
 0x893   :  { %3936 = shalt.err (!%p3933_p6)
}
 0x894   :  { %3109 = dma.vmem_to_hbm [thread:$0]  %s3104_s19, 256, %s4775_s15, [#allocation15], %s3982_s17, %s3982_s17, %s3983_s18  }
 0x895   :  { %s3993_s3 = smov [#allocation13]  }
 0x896   :  { %s3094_s1 = sshll.u32 %s3993_s3, 4  ;;  %s3095_s1 = int_to_ptr.vmem [resolvable:$true] %s3094_s1 }
 0x897   :  { %s3945_s21 = scalar_lea.vmem %s3095_s1, 128  ;;  %p3950_p8 = scmp.lt.s32.totalorder %s3095_s1, %s3095_s1 }
 0x898   :  { %p3946_p7 = scmp.ne.s32.totalorder %s3095_s1, %s3945_s21  ;;  %p3951_p9 = scmp.lt.s32.totalorder %s3945_s21, %s3945_s21 }
 0x89a   :  { %p3952_p10 = por %p3951_p9, %p3950_p8 }
 0x89c   :  { %p3953_p11 = pnand %p3952_p10, %p3946_p7 }
 0x91b   :  { %v3084_v33 = vpop.xlane.xlu1 %3083 }
 0x91c   :  { %3803 = vrcp.f32 %v3084_v33 }
 0x929   :  { %v3804_v20 = vpop.eup %3803 }
 0x92a   :  { %v3086_v21 = vmul.f32 %v3804_v20, %v3802_v19 }
 0x92c   :  { %3087 = vst [vmem:[#allocation13] sm:$0xff] %v3086_v21 }
 0x92d   :  { %3956 = shalt.err (!%p3953_p11)
}
 0x92e   :  { %3097 = dma.vmem_to_hbm [thread:$0]  %s3095_s1, 128, %s4774_s14, [#allocation4]  }
 0x92f   :  { %3973 = dma.done.wait [#allocation4], 128  }
 0x930   :  { %3974 = vsyncadd [#allocation4], 4294967168 }
 0x931   :  { %3975 = dma.done.wait [#allocation15], 256  }
 0x932   :  { %3976 = vsyncadd [#allocation15], 4294967040 }
 0x933   :  { %3116 = vsyncpa [#allocation3], 1 }
 0x934   :  { %3117 = vsyncpa [#allocation6], 1 }
 0x935   :  { %3118 = vsyncpa [#allocation9], 1 }
 0x936   :  { %3119 = vsyncpa [#allocation12], 1 }
 0x937   :  { %3120 = vsyncpa [#allocation4], 1 }
 0x938   :  { %3121 = vsyncpa [#allocation15], 1 }

</bundles_post_ra>
